<compile_context>
chip_gen: v5e
topology: v5e:2x2
jax: 0.10.0
libtpu: 0.0.40
codegen_flags: <defaults>
</compile_context>

<pallas_src>
import functools

import jax
import jax.numpy as jnp
from jax import lax
from jax.experimental import pallas as pl
from jax.experimental.pallas import tpu as pltpu


def _round_up(x, m):
    return ((x + m - 1) // m) * m


def _roi_match_kernel(num_classes, lo_thresh, hi_thresh, cls_bits, write_iou,
                      gt_ref, prop_ref, *out_refs):
    """One grid step: one image's (padded) gt boxes vs one lane-tile of proposals.

    gt_ref:   [Mp, 5]  cols 0..3 = x1,y1,x2,y2 ; col 4 = bitcast(row<<cls_bits | class)
    prop_ref: [4, TN]  rows = x1,y1,x2,y2 (proposal axis on lanes)
    out_refs: optional iou [Mp, TN] f32, then packed ints [4, TN] int32
    """
    if write_iou:
        iou_ref, out_ref = out_refs
    else:
        iou_ref = None
        (out_ref,) = out_refs

    m_pad = gt_ref.shape[0]
    tile = prop_ref.shape[1]
    n_chunks = m_pad // 8

    # proposal components -> row vectors [1, TN]
    px1 = prop_ref[0:1, :]
    py1 = prop_ref[1:2, :]
    px2 = prop_ref[2:3, :]
    py2 = prop_ref[3:4, :]
    parea = (px2 - px1) * (py2 - py1)

    big_key = jnp.int32(m_pad << cls_bits)

    def chunk_update(c, run_max, run_key):
        start = c * 8
        if not isinstance(start, int):
            start = pl.multiple_of(start, 8)
        g = gt_ref[pl.ds(start, 8), :]                    # [8, 5]
        gx1 = g[:, 0:1]
        gy1 = g[:, 1:2]
        gx2 = g[:, 2:3]
        gy2 = g[:, 3:4]
        key = pltpu.bitcast(g[:, 4:5], jnp.int32)         # [8, 1]

        # pairwise_iou (detectron2 Boxes semantics: area = (x2-x1)*(y2-y1), no +1)
        iw = jnp.maximum(jnp.minimum(gx2, px2) - jnp.maximum(gx1, px1), 0.0)
        ih = jnp.maximum(jnp.minimum(gy2, py2) - jnp.maximum(gy1, py1), 0.0)
        inter = iw * ih                                   # [8, TN]
        garea = (gx2 - gx1) * (gy2 - gy1)                 # [8, 1]
        union = garea + parea - inter
        safe_union = jnp.where(union > 0.0, union, 1.0)   # keep recip finite
        # inter == 0 already yields iou == 0, so no extra select needed.
        iou = inter * pl.reciprocal(safe_union, approx=False)   # EUP slot

        if write_iou:
            iou_ref[pl.ds(start, 8), :] = iou

        # chunk-local max + packed (row, class) key; lowest row wins chunk ties
        c_max = jnp.max(iou, axis=0, keepdims=True)       # [1, TN]
        c_key = jnp.min(jnp.where(iou >= c_max, key, big_key),
                        axis=0, keepdims=True)            # [1, TN]
        # merge into the running reduction; strict '>' keeps the lowest gt row
        take = c_max > run_max
        return jnp.where(take, c_max, run_max), jnp.where(take, c_key, run_key)

    run_max = jnp.full((1, tile), -1.0, jnp.float32)
    run_key = jnp.full((1, tile), big_key, jnp.int32)
    if n_chunks <= 8:
        # short fixed trip count: fully static (carry dependence bounds liveness)
        for c in range(n_chunks):
            run_max, run_key = chunk_update(c, run_max, run_key)
    else:
        run_max, run_key = lax.fori_loop(
            0, n_chunks,
            lambda c, carry: chunk_update(c, carry[0], carry[1]),
            (run_max, run_key))

    vals = run_max                                        # [1, TN] f32
    idxs = (run_key >> cls_bits).astype(jnp.int32)
    cls = (run_key & jnp.int32((1 << cls_bits) - 1)).astype(jnp.int32)

    # Matcher thresholds [lo, hi] with IOU_LABELS [0, -1, 1]:
    #   iou < lo -> 0 (bg);  lo <= iou < hi -> -1 (ignore);  iou >= hi -> 1 (fg)
    labels = jnp.where(vals < lo_thresh, jnp.int32(0),
                       jnp.where(vals < hi_thresh, jnp.int32(-1),
                                 jnp.int32(1))).astype(jnp.int32)

    # _sample_proposals class assignment overrides.
    cls = jnp.where(labels == 0, jnp.int32(num_classes), cls)
    cls = jnp.where(labels == -1, jnp.int32(-1), cls)

    # Single packed (4, TN) int32 store: bitcast(vals), idxs, labels, cls.
    out_ref[...] = jnp.concatenate(
        [pltpu.bitcast(vals, jnp.int32), idxs, labels, cls], axis=0)


def roi_match_and_label(gt_boxes, proposal_boxes, gt_classes, *,
                        num_classes, iou_thresholds=(0.3, 0.7),
                        tile_n=1024, return_iou=False):
    """Pallas-backed pairwise_iou + Matcher + class-label assignment (batched).

    Args:
      gt_boxes:        [B, M, 4] or [M, 4] float32 (x1, y1, x2, y2); pad unused
                       gt rows with zeros (zero-area boxes never match).
      proposal_boxes:  [B, N, 4] or [N, 4] float32
      gt_classes:      [B, M] or [M] int32, values in [0, num_classes)
    Returns (batched shapes; leading B squeezed if inputs were unbatched):
      iou            [B, M, N] float32 (or None when return_iou=False)
      matched_vals   [B, N]    float32
      matched_idxs   [B, N]    int32
      matched_labels [B, N]    int32   (in {1, 0, -1})
      prop_classes   [B, N]    int32   (class in [0, num_classes], or -1 ignore)
    """
    gt_boxes = jnp.asarray(gt_boxes, jnp.float32)
    proposal_boxes = jnp.asarray(proposal_boxes, jnp.float32)
    gt_classes = jnp.asarray(gt_classes, jnp.int32)

    squeeze = gt_boxes.ndim == 2
    if squeeze:
        gt_boxes = gt_boxes[None]
        proposal_boxes = proposal_boxes[None]
        gt_classes = gt_classes[None]

    B, M = gt_boxes.shape[0], gt_boxes.shape[1]
    N = proposal_boxes.shape[1]
    lo, hi = float(iou_thresholds[0]), float(iou_thresholds[1])

    def _sq(x):
        return None if x is None else (x[0] if squeeze else x)

    if M == 0 or N == 0:
        # detectron2 special-cases "no gt": everything is background.
        vals = jnp.zeros((B, N), jnp.float32)
        idxs = jnp.zeros((B, N), jnp.int32)
        labels = jnp.zeros((B, N), jnp.int32)
        cls = jnp.full((B, N), num_classes, jnp.int32)
        iou = jnp.zeros((B, M, N), jnp.float32) if return_iou else None
        return _sq(iou), _sq(vals), _sq(idxs), _sq(labels), _sq(cls)

    assert tile_n % 128 == 0, "tile_n must be a multiple of the 128-wide lane axis"

    n128 = _round_up(N, 128)
    tile = min(n128, tile_n)
    n_pad = _round_up(N, tile)
    m_pad = max(_round_up(M, 8), 8)

    # Packed key: high bits = gt row index, low bits = gt class.
    cls_bits = max(int(num_classes - 1).bit_length(), 1)
    assert m_pad < (1 << (30 - cls_bits)), "packed key would overflow int32"

    # One gt input slab per image: [B, Mp, 5] = coords + bitcast(packed key).
    gt_p = jnp.pad(gt_boxes, ((0, 0), (0, m_pad - M), (0, 0)))
    cls_p = jnp.pad(gt_classes, ((0, 0), (0, m_pad - M)))       # padded rows: class 0
    key = (jnp.arange(m_pad, dtype=jnp.int32)[None, :] << cls_bits) | cls_p
    key_f = lax.bitcast_convert_type(key, jnp.float32)
    gt_packed = jnp.concatenate([gt_p, key_f[..., None]], axis=-1)   # [B, Mp, 5]

    # Proposals transposed + padded so the proposal axis rides the lane axis.
    prop_t = jnp.pad(jnp.swapaxes(proposal_boxes, -1, -2),
                     ((0, 0), (0, 0), (0, n_pad - N)))               # [B, 4, Np]

    kernel = functools.partial(_roi_match_kernel, int(num_classes), lo, hi,
                               cls_bits, return_iou)

    out_shape = []
    out_specs = []
    if return_iou:
        out_shape.append(jax.ShapeDtypeStruct((B, m_pad, n_pad), jnp.float32))
        out_specs.append(pl.BlockSpec((None, m_pad, tile), lambda b, i: (b, 0, i)))
    out_shape.append(jax.ShapeDtypeStruct((B, 4, n_pad), jnp.int32))
    out_specs.append(pl.BlockSpec((None, 4, tile), lambda b, i: (b, 0, i)))

    # True double-buffered footprint + modest headroom (well under any chip's VMEM).
    per_step = (m_pad * 5 + 4 * tile + 4 * tile) * 4
    if return_iou:
        per_step += m_pad * tile * 4
    vmem_limit = int(min(4 * per_step + (4 << 20), 32 << 20))

    outs = pl.pallas_call(
        kernel,
        out_shape=tuple(out_shape),
        grid_spec=pltpu.PrefetchScalarGridSpec(
            num_scalar_prefetch=0,
            grid=(B, n_pad // tile),
            in_specs=[
                pl.BlockSpec((None, m_pad, 5), lambda b, i: (b, 0, 0)),   # gt slab
                pl.BlockSpec((None, 4, tile), lambda b, i: (b, 0, i)),    # proposal tile
            ],
            out_specs=out_specs,
        ),
        compiler_params=pltpu.CompilerParams(
            dimension_semantics=("parallel", "parallel"),
            vmem_limit_bytes=vmem_limit),
    )(gt_packed, prop_t)

    if return_iou:
        iou_pad, ints = outs
        iou = iou_pad[:, :M, :N]
    else:
        ints = outs[0]
        iou = None

    vals = lax.bitcast_convert_type(ints[:, 0, :N], jnp.float32)
    idxs = ints[:, 1, :N]
    labels = ints[:, 2, :N]
    cls = ints[:, 3, :N]
    return _sq(iou), _sq(vals), _sq(idxs), _sq(labels), _sq(cls)


class ROIHeadsPallas:
    """Minimal ROIHeads-like holder of the matching config; uses the Pallas kernel."""

    def __init__(self, num_classes=80, iou_thresholds=(0.3, 0.7),
                 batch_size_per_image=128, positive_fraction=0.25):
        self.num_classes = num_classes
        self.iou_thresholds = iou_thresholds
        self.batch_size_per_image = batch_size_per_image
        self.positive_fraction = positive_fraction

    def label_proposals(self, gt_boxes, proposal_boxes, gt_classes,
                        return_iou=False):
        out = roi_match_and_label(gt_boxes, proposal_boxes, gt_classes,
                                  num_classes=self.num_classes,
                                  iou_thresholds=self.iou_thresholds,
                                  return_iou=return_iou)
        # TODO(synk): subsample_labels (random fg/bg permutation sampling via
        # torch.randperm) has no clean deterministic Pallas equivalent; labels
        # are returned for all proposals.
        return out

    def forward(self, *args, **kwargs):
        # Base-class ROIHeads.forward is abstract in detectron2.
        raise NotImplementedError()


def _reference(gt, prop, gtc, num_classes, lo, hi):
    gx1, gy1, gx2, gy2 = (gt[:, i:i + 1] for i in range(4))
    px1, py1, px2, py2 = (prop[:, i][None, :] for i in range(4))
    iw = jnp.maximum(jnp.minimum(gx2, px2) - jnp.maximum(gx1, px1), 0.0)
    ih = jnp.maximum(jnp.minimum(gy2, py2) - jnp.maximum(gy1, py1), 0.0)
    inter = iw * ih
    union = (gx2 - gx1) * (gy2 - gy1) + (px2 - px1) * (py2 - py1) - inter
    iou = jnp.where(inter > 0, inter / union, 0.0)
    vals = iou.max(axis=0)
    idxs = jnp.argmax(iou, axis=0)
    labels = jnp.where(vals < lo, 0, jnp.where(vals < hi, -1, 1)).astype(jnp.int32)
    cls = gtc[idxs]
    cls = jnp.where(labels == 0, num_classes, cls)
    cls = jnp.where(labels == -1, -1, cls)
    return iou, vals, idxs.astype(jnp.int32), labels, cls.astype(jnp.int32)


if __name__ == "__main__":
    key = jax.random.PRNGKey(0)
    k1, k2, k3, k4, k5 = jax.random.split(key, 5)

    B, M, N = 2, 13, 1000     # deliberately not multiples of 8 / 128 (exercise padding)
    num_classes = 80

    # deterministic, well-formed boxes (x1 < x2, y1 < y2), image ~ 256x256
    gt_xy = jax.random.uniform(k1, (B, M, 2), minval=0.0, maxval=200.0)
    gt_wh = jax.random.uniform(k2, (B, M, 2), minval=8.0, maxval=56.0)
    gt_boxes = jnp.concatenate([gt_xy, gt_xy + gt_wh], axis=-1).astype(jnp.float32)

    pr_xy = jax.random.uniform(k3, (B, N, 2), minval=0.0, maxval=200.0)
    pr_wh = jax.random.uniform(k4, (B, N, 2), minval=8.0, maxval=56.0)
    proposal_boxes = jnp.concatenate([pr_xy, pr_xy + pr_wh], axis=-1).astype(jnp.float32)

    gt_classes = jax.random.randint(k5, (B, M), 0, num_classes, dtype=jnp.int32)

    heads = ROIHeadsPallas(num_classes=num_classes, iou_thresholds=(0.3, 0.7))

    # Full-output path (with IoU matrix) for validation.
    iou, vals, idxs, labels, cls = heads.label_proposals(
        gt_boxes, proposal_boxes, gt_classes, return_iou=True)
    # Traffic-lean default path (no [B, M, N] IoU writeback).
    _, vals2, idxs2, labels2, cls2 = heads.label_proposals(
        gt_boxes, proposal_boxes, gt_classes, return_iou=False)
    jax.block_until_ready((iou, vals, idxs, labels, cls,
                           vals2, idxs2, labels2, cls2))

    # correctness check against pure-JAX reference, per image
    ok = True
    for b in range(B):
        r_iou, r_vals, r_idxs, r_labels, r_cls = _reference(
            gt_boxes[b], proposal_boxes[b], gt_classes[b], num_classes, 0.3, 0.7)
        ok &= bool(jnp.allclose(iou[b], r_iou, atol=1e-5))
        ok &= bool(jnp.allclose(vals[b], r_vals, atol=1e-5))
        ok &= bool(jnp.all(idxs[b] == r_idxs))
        ok &= bool(jnp.all(labels[b] == r_labels))
        ok &= bool(jnp.all(cls[b] == r_cls))
    assert ok

    # lean path agrees with full path
    assert bool(jnp.allclose(vals2, vals))
    assert bool(jnp.all(idxs2 == idxs))
    assert bool(jnp.all(labels2 == labels))
    assert bool(jnp.all(cls2 == cls))

    # single-image (unbatched) convenience path still works
    iou1, v1, i1, l1, c1 = heads.label_proposals(
        gt_boxes[0], proposal_boxes[0], gt_classes[0], return_iou=True)
    jax.block_until_ready((iou1, v1, i1, l1, c1))
    assert bool(jnp.allclose(v1, vals[0]))
    assert bool(jnp.all(i1 == idxs[0]))
    assert bool(jnp.all(l1 == labels[0]))
    assert bool(jnp.all(c1 == cls[0]))

    print("KERNEL_OK")
</pallas_src>

<mosaic_0001>
module attributes {stable_mosaic.version = 11 : i64} {
  func.func @_roi_match_kernel(%arg0: i32, %arg1: i32, %arg2: memref<1x16x5xf32, #tpu.memory_space<vmem>>, %arg3: memref<1x4x1024xf32, #tpu.memory_space<vmem>>, %arg4: memref<1x16x1024xf32, #tpu.memory_space<vmem>>, %arg5: memref<1x4x1024xi32, #tpu.memory_space<vmem>>) attributes {dimension_semantics = [#tpu.dimension_semantics<parallel>, #tpu.dimension_semantics<parallel>], iteration_bounds = array<i64: 2, 1>, scalar_prefetch = 0 : i64, scratch_operands = 0 : i64, tpu.core_type = #tpu.core_type<tc>, window_params = [{transform_indices = @transform_0, window_bounds = array<i64: 1, 16, 5>}, {transform_indices = @transform_1, window_bounds = array<i64: 1, 4, 1024>}, {transform_indices = @transform_2, window_bounds = array<i64: 1, 16, 1024>}, {transform_indices = @transform_3, window_bounds = array<i64: 1, 4, 1024>}]} {
    %c0 = arith.constant 0 : index
    %c0_0 = arith.constant 0 : index
    %c0_1 = arith.constant 0 : index
    %0 = vector.load %arg3[%c0, %c0_0, %c0_1] : memref<1x4x1024xf32, #tpu.memory_space<vmem>>, vector<1x1x1024xf32>
    %1 = vector.shape_cast %0 : vector<1x1x1024xf32> to vector<1x1024xf32>
    %c0_2 = arith.constant 0 : index
    %c1 = arith.constant 1 : index
    %c0_3 = arith.constant 0 : index
    %2 = vector.load %arg3[%c0_2, %c1, %c0_3] : memref<1x4x1024xf32, #tpu.memory_space<vmem>>, vector<1x1x1024xf32>
    %3 = vector.shape_cast %2 : vector<1x1x1024xf32> to vector<1x1024xf32>
    %c0_4 = arith.constant 0 : index
    %c2 = arith.constant 2 : index
    %c0_5 = arith.constant 0 : index
    %4 = vector.load %arg3[%c0_4, %c2, %c0_5] : memref<1x4x1024xf32, #tpu.memory_space<vmem>>, vector<1x1x1024xf32>
    %5 = vector.shape_cast %4 : vector<1x1x1024xf32> to vector<1x1024xf32>
    %c0_6 = arith.constant 0 : index
    %c3 = arith.constant 3 : index
    %c0_7 = arith.constant 0 : index
    %6 = vector.load %arg3[%c0_6, %c3, %c0_7] : memref<1x4x1024xf32, #tpu.memory_space<vmem>>, vector<1x1x1024xf32>
    %7 = vector.shape_cast %6 : vector<1x1x1024xf32> to vector<1x1024xf32>
    %8 = arith.subf %5, %1 : vector<1x1024xf32>
    %9 = arith.subf %7, %3 : vector<1x1024xf32>
    %10 = arith.mulf %8, %9 : vector<1x1024xf32>
    %cst = arith.constant -1.000000e+00 : f32
    %11 = vector.broadcast %cst : f32 to vector<1x1024xf32>
    %c2048_i32 = arith.constant 2048 : i32
    %12 = vector.broadcast %c2048_i32 : i32 to vector<1x1024xi32>
    %c0_8 = arith.constant 0 : index
    %c0_9 = arith.constant 0 : index
    %c0_10 = arith.constant 0 : index
    %13 = vector.load %arg2[%c0_8, %c0_9, %c0_10] : memref<1x16x5xf32, #tpu.memory_space<vmem>>, vector<1x8x5xf32>
    %14 = vector.shape_cast %13 : vector<1x8x5xf32> to vector<8x5xf32>
    %15 = vector.extract_strided_slice %14 {offsets = [0, 0], sizes = [8, 1], strides = [1, 1]} : vector<8x5xf32> to vector<8x1xf32>
    %16 = vector.extract_strided_slice %14 {offsets = [0, 1], sizes = [8, 1], strides = [1, 1]} : vector<8x5xf32> to vector<8x1xf32>
    %17 = vector.extract_strided_slice %14 {offsets = [0, 2], sizes = [8, 1], strides = [1, 1]} : vector<8x5xf32> to vector<8x1xf32>
    %18 = vector.extract_strided_slice %14 {offsets = [0, 3], sizes = [8, 1], strides = [1, 1]} : vector<8x5xf32> to vector<8x1xf32>
    %19 = vector.extract_strided_slice %14 {offsets = [0, 4], sizes = [8, 1], strides = [1, 1]} : vector<8x5xf32> to vector<8x1xf32>
    %20 = tpu.bitcast %19 : vector<8x1xf32> -> vector<8x1xi32>
    %21 = vector.broadcast %17 : vector<8x1xf32> to vector<8x1024xf32>
    %22 = vector.broadcast %5 : vector<1x1024xf32> to vector<8x1024xf32>
    %23 = arith.minimumf %21, %22 : vector<8x1024xf32>
    %24 = vector.broadcast %15 : vector<8x1xf32> to vector<8x1024xf32>
    %25 = vector.broadcast %1 : vector<1x1024xf32> to vector<8x1024xf32>
    %26 = arith.maximumf %24, %25 : vector<8x1024xf32>
    %27 = arith.subf %23, %26 : vector<8x1024xf32>
    %cst_11 = arith.constant 0.000000e+00 : f32
    %28 = vector.broadcast %cst_11 : f32 to vector<8x1024xf32>
    %29 = arith.maximumf %27, %28 : vector<8x1024xf32>
    %30 = vector.broadcast %18 : vector<8x1xf32> to vector<8x1024xf32>
    %31 = vector.broadcast %7 : vector<1x1024xf32> to vector<8x1024xf32>
    %32 = arith.minimumf %30, %31 : vector<8x1024xf32>
    %33 = vector.broadcast %16 : vector<8x1xf32> to vector<8x1024xf32>
    %34 = vector.broadcast %3 : vector<1x1024xf32> to vector<8x1024xf32>
    %35 = arith.maximumf %33, %34 : vector<8x1024xf32>
    %36 = arith.subf %32, %35 : vector<8x1024xf32>
    %cst_12 = arith.constant 0.000000e+00 : f32
    %37 = vector.broadcast %cst_12 : f32 to vector<8x1024xf32>
    %38 = arith.maximumf %36, %37 : vector<8x1024xf32>
    %39 = arith.mulf %29, %38 : vector<8x1024xf32>
    %40 = arith.subf %17, %15 : vector<8x1xf32>
    %41 = arith.subf %18, %16 : vector<8x1xf32>
    %42 = arith.mulf %40, %41 : vector<8x1xf32>
    %43 = vector.broadcast %42 : vector<8x1xf32> to vector<8x1024xf32>
    %44 = vector.broadcast %10 : vector<1x1024xf32> to vector<8x1024xf32>
    %45 = arith.addf %43, %44 : vector<8x1024xf32>
    %46 = arith.subf %45, %39 : vector<8x1024xf32>
    %cst_13 = arith.constant 0.000000e+00 : f32
    %47 = vector.broadcast %cst_13 : f32 to vector<8x1024xf32>
    %48 = arith.cmpf ogt, %46, %47 : vector<8x1024xf32>
    %cst_14 = arith.constant 1.000000e+00 : f32
    %49 = vector.broadcast %cst_14 : f32 to vector<8x1024xf32>
    %50 = arith.select %48, %46, %49 : vector<8x1024xi1>, vector<8x1024xf32>
    %51 = tpu.reciprocal %50 : vector<8x1024xf32> -> vector<8x1024xf32>
    %52 = arith.mulf %39, %51 : vector<8x1024xf32>
    %c0_15 = arith.constant 0 : index
    %c0_16 = arith.constant 0 : index
    %c0_17 = arith.constant 0 : index
    %53 = vector.load %arg4[%c0_15, %c0_16, %c0_17] : memref<1x16x1024xf32, #tpu.memory_space<vmem>>, vector<1x8x1024xf32>
    %54 = vector.shape_cast %53 : vector<1x8x1024xf32> to vector<8x1024xf32>
    %55 = vector.shape_cast %52 : vector<8x1024xf32> to vector<1x8x1024xf32>
    tpu.vector_store %arg4[%c0_15, %c0_16, %c0_17], %55 {strides = array<i32>} : memref<1x16x1024xf32, #tpu.memory_space<vmem>>, vector<1x8x1024xf32>,
    %cst_18 = arith.constant dense<0xFF800000> : vector<1024xf32>
    %56 = vector.multi_reduction <maximumf>, %52, %cst_18 [0] : vector<8x1024xf32> to vector<1024xf32>
    %57 = vector.shape_cast %56 : vector<1024xf32> to vector<1x1024xf32>
    %58 = vector.broadcast %57 : vector<1x1024xf32> to vector<8x1024xf32>
    %59 = arith.cmpf oge, %52, %58 : vector<8x1024xf32>
    %c2048_i32_19 = arith.constant 2048 : i32
    %60 = vector.shape_cast %20 : vector<8x1xi32> to vector<8x1xi32>
    %61 = vector.broadcast %60 : vector<8x1xi32> to vector<8x1024xi32>
    %62 = vector.broadcast %c2048_i32_19 : i32 to vector<8x1024xi32>
    %63 = arith.select %59, %61, %62 : vector<8x1024xi1>, vector<8x1024xi32>
    %cst_20 = arith.constant dense<2147483647> : vector<1024xi32>
    %64 = vector.multi_reduction <minsi>, %63, %cst_20 [0] : vector<8x1024xi32> to vector<1024xi32>
    %65 = vector.shape_cast %64 : vector<1024xi32> to vector<1x1024xi32>
    %66 = arith.cmpf ogt, %57, %11 : vector<1x1024xf32>
    %67 = arith.select %66, %57, %11 : vector<1x1024xi1>, vector<1x1024xf32>
    %68 = arith.select %66, %65, %12 : vector<1x1024xi1>, vector<1x1024xi32>
    %c0_21 = arith.constant 0 : index
    %c8 = arith.constant 8 : index
    %c0_22 = arith.constant 0 : index
    %69 = vector.load %arg2[%c0_21, %c8, %c0_22] : memref<1x16x5xf32, #tpu.memory_space<vmem>>, vector<1x8x5xf32>
    %70 = vector.shape_cast %69 : vector<1x8x5xf32> to vector<8x5xf32>
    %71 = vector.extract_strided_slice %70 {offsets = [0, 0], sizes = [8, 1], strides = [1, 1]} : vector<8x5xf32> to vector<8x1xf32>
    %72 = vector.extract_strided_slice %70 {offsets = [0, 1], sizes = [8, 1], strides = [1, 1]} : vector<8x5xf32> to vector<8x1xf32>
    %73 = vector.extract_strided_slice %70 {offsets = [0, 2], sizes = [8, 1], strides = [1, 1]} : vector<8x5xf32> to vector<8x1xf32>
    %74 = vector.extract_strided_slice %70 {offsets = [0, 3], sizes = [8, 1], strides = [1, 1]} : vector<8x5xf32> to vector<8x1xf32>
    %75 = vector.extract_strided_slice %70 {offsets = [0, 4], sizes = [8, 1], strides = [1, 1]} : vector<8x5xf32> to vector<8x1xf32>
    %76 = tpu.bitcast %75 : vector<8x1xf32> -> vector<8x1xi32>
    %77 = vector.broadcast %73 : vector<8x1xf32> to vector<8x1024xf32>
    %78 = vector.broadcast %5 : vector<1x1024xf32> to vector<8x1024xf32>
    %79 = arith.minimumf %77, %78 : vector<8x1024xf32>
    %80 = vector.broadcast %71 : vector<8x1xf32> to vector<8x1024xf32>
    %81 = vector.broadcast %1 : vector<1x1024xf32> to vector<8x1024xf32>
    %82 = arith.maximumf %80, %81 : vector<8x1024xf32>
    %83 = arith.subf %79, %82 : vector<8x1024xf32>
    %cst_23 = arith.constant 0.000000e+00 : f32
    %84 = vector.broadcast %cst_23 : f32 to vector<8x1024xf32>
    %85 = arith.maximumf %83, %84 : vector<8x1024xf32>
    %86 = vector.broadcast %74 : vector<8x1xf32> to vector<8x1024xf32>
    %87 = vector.broadcast %7 : vector<1x1024xf32> to vector<8x1024xf32>
    %88 = arith.minimumf %86, %87 : vector<8x1024xf32>
    %89 = vector.broadcast %72 : vector<8x1xf32> to vector<8x1024xf32>
    %90 = vector.broadcast %3 : vector<1x1024xf32> to vector<8x1024xf32>
    %91 = arith.maximumf %89, %90 : vector<8x1024xf32>
    %92 = arith.subf %88, %91 : vector<8x1024xf32>
    %cst_24 = arith.constant 0.000000e+00 : f32
    %93 = vector.broadcast %cst_24 : f32 to vector<8x1024xf32>
    %94 = arith.maximumf %92, %93 : vector<8x1024xf32>
    %95 = arith.mulf %85, %94 : vector<8x1024xf32>
    %96 = arith.subf %73, %71 : vector<8x1xf32>
    %97 = arith.subf %74, %72 : vector<8x1xf32>
    %98 = arith.mulf %96, %97 : vector<8x1xf32>
    %99 = vector.broadcast %98 : vector<8x1xf32> to vector<8x1024xf32>
    %100 = vector.broadcast %10 : vector<1x1024xf32> to vector<8x1024xf32>
    %101 = arith.addf %99, %100 : vector<8x1024xf32>
    %102 = arith.subf %101, %95 : vector<8x1024xf32>
    %cst_25 = arith.constant 0.000000e+00 : f32
    %103 = vector.broadcast %cst_25 : f32 to vector<8x1024xf32>
    %104 = arith.cmpf ogt, %102, %103 : vector<8x1024xf32>
    %cst_26 = arith.constant 1.000000e+00 : f32
    %105 = vector.broadcast %cst_26 : f32 to vector<8x1024xf32>
    %106 = arith.select %104, %102, %105 : vector<8x1024xi1>, vector<8x1024xf32>
    %107 = tpu.reciprocal %106 : vector<8x1024xf32> -> vector<8x1024xf32>
    %108 = arith.mulf %95, %107 : vector<8x1024xf32>
    %c0_27 = arith.constant 0 : index
    %c8_28 = arith.constant 8 : index
    %c0_29 = arith.constant 0 : index
    %109 = vector.load %arg4[%c0_27, %c8_28, %c0_29] : memref<1x16x1024xf32, #tpu.memory_space<vmem>>, vector<1x8x1024xf32>
    %110 = vector.shape_cast %109 : vector<1x8x1024xf32> to vector<8x1024xf32>
    %111 = vector.shape_cast %108 : vector<8x1024xf32> to vector<1x8x1024xf32>
    tpu.vector_store %arg4[%c0_27, %c8_28, %c0_29], %111 {strides = array<i32>} : memref<1x16x1024xf32, #tpu.memory_space<vmem>>, vector<1x8x1024xf32>,
    %cst_30 = arith.constant dense<0xFF800000> : vector<1024xf32>
    %112 = vector.multi_reduction <maximumf>, %108, %cst_30 [0] : vector<8x1024xf32> to vector<1024xf32>
    %113 = vector.shape_cast %112 : vector<1024xf32> to vector<1x1024xf32>
    %114 = vector.broadcast %113 : vector<1x1024xf32> to vector<8x1024xf32>
    %115 = arith.cmpf oge, %108, %114 : vector<8x1024xf32>
    %c2048_i32_31 = arith.constant 2048 : i32
    %116 = vector.shape_cast %76 : vector<8x1xi32> to vector<8x1xi32>
    %117 = vector.broadcast %116 : vector<8x1xi32> to vector<8x1024xi32>
    %118 = vector.broadcast %c2048_i32_31 : i32 to vector<8x1024xi32>
    %119 = arith.select %115, %117, %118 : vector<8x1024xi1>, vector<8x1024xi32>
    %cst_32 = arith.constant dense<2147483647> : vector<1024xi32>
    %120 = vector.multi_reduction <minsi>, %119, %cst_32 [0] : vector<8x1024xi32> to vector<1024xi32>
    %121 = vector.shape_cast %120 : vector<1024xi32> to vector<1x1024xi32>
    %122 = arith.cmpf ogt, %113, %67 : vector<1x1024xf32>
    %123 = arith.select %122, %113, %67 : vector<1x1024xi1>, vector<1x1024xf32>
    %124 = arith.select %122, %121, %68 : vector<1x1024xi1>, vector<1x1024xi32>
    %c7_i32 = arith.constant 7 : i32
    %125 = vector.broadcast %c7_i32 : i32 to vector<1x1024xi32>
    %126 = arith.shrsi %124, %125 : vector<1x1024xi32>
    %c127_i32 = arith.constant 127 : i32
    %127 = vector.broadcast %c127_i32 : i32 to vector<1x1024xi32>
    %128 = arith.andi %124, %127 : vector<1x1024xi32>
    %cst_33 = arith.constant 3.000000e-01 : f32
    %129 = vector.broadcast %cst_33 : f32 to vector<1x1024xf32>
    %130 = arith.cmpf olt, %123, %129 : vector<1x1024xf32>
    %cst_34 = arith.constant 0.699999988 : f32
    %131 = vector.broadcast %cst_34 : f32 to vector<1x1024xf32>
    %132 = arith.cmpf olt, %123, %131 : vector<1x1024xf32>
    %c-1_i32 = arith.constant -1 : i32
    %c1_i32 = arith.constant 1 : i32
    %133 = vector.broadcast %c-1_i32 : i32 to vector<1x1024xi32>
    %134 = vector.broadcast %c1_i32 : i32 to vector<1x1024xi32>
    %135 = arith.select %132, %133, %134 : vector<1x1024xi1>, vector<1x1024xi32>
    %c0_i32 = arith.constant 0 : i32
    %136 = vector.broadcast %c0_i32 : i32 to vector<1x1024xi32>
    %137 = arith.select %130, %136, %135 : vector<1x1024xi1>, vector<1x1024xi32>
    %c0_i32_35 = arith.constant 0 : i32
    %138 = vector.broadcast %c0_i32_35 : i32 to vector<1x1024xi32>
    %139 = arith.cmpi eq, %137, %138 : vector<1x1024xi32>
    %c80_i32 = arith.constant 80 : i32
    %140 = vector.broadcast %c80_i32 : i32 to vector<1x1024xi32>
    %141 = arith.select %139, %140, %128 : vector<1x1024xi1>, vector<1x1024xi32>
    %c-1_i32_36 = arith.constant -1 : i32
    %142 = vector.broadcast %c-1_i32_36 : i32 to vector<1x1024xi32>
    %143 = arith.cmpi eq, %137, %142 : vector<1x1024xi32>
    %c-1_i32_37 = arith.constant -1 : i32
    %144 = vector.broadcast %c-1_i32_37 : i32 to vector<1x1024xi32>
    %145 = arith.select %143, %144, %141 : vector<1x1024xi1>, vector<1x1024xi32>
    %146 = tpu.bitcast %123 : vector<1x1024xf32> -> vector<1x1024xi32>
    %147 = tpu.concatenate %146, %126, %137, %145 in 0 : vector<1x1024xi32>, vector<1x1024xi32>, vector<1x1024xi32>, vector<1x1024xi32> -> vector<4x1024xi32>
    %c0_38 = arith.constant 0 : index
    %c0_39 = arith.constant 0 : index
    %c0_40 = arith.constant 0 : index
    %148 = vector.load %arg5[%c0_38, %c0_39, %c0_40] : memref<1x4x1024xi32, #tpu.memory_space<vmem>>, vector<1x4x1024xi32>
    %149 = vector.shape_cast %148 : vector<1x4x1024xi32> to vector<4x1024xi32>
    %150 = vector.shape_cast %147 : vector<4x1024xi32> to vector<1x4x1024xi32>
    tpu.vector_store %arg5[%c0_38, %c0_39, %c0_40], %150 {strides = array<i32>} : memref<1x4x1024xi32, #tpu.memory_space<vmem>>, vector<1x4x1024xi32>,
    return
  }
  func.func @transform_0(%arg0: i32, %arg1: i32) -> (i32, i32, i32) {
    %c0_i32 = arith.constant 0 : i32
    %c0_i32_0 = arith.constant 0 : i32
    %c0_i32_1 = arith.constant 0 : i32
    return %arg0, %c0_i32, %c0_i32_0 : i32, i32, i32
  }
  func.func @transform_1(%arg0: i32, %arg1: i32) -> (i32, i32, i32) {
    %c0_i32 = arith.constant 0 : i32
    %c0_i32_0 = arith.constant 0 : i32
    return %arg0, %c0_i32, %arg1 : i32, i32, i32
  }
  func.func @transform_2(%arg0: i32, %arg1: i32) -> (i32, i32, i32) {
    %c0_i32 = arith.constant 0 : i32
    %c0_i32_0 = arith.constant 0 : i32
    return %arg0, %c0_i32, %arg1 : i32, i32, i32
  }
  func.func @transform_3(%arg0: i32, %arg1: i32) -> (i32, i32, i32) {
    %c0_i32 = arith.constant 0 : i32
    %c0_i32_0 = arith.constant 0 : i32
    return %arg0, %c0_i32, %arg1 : i32, i32, i32
  }
}

</mosaic_0001>

<bundles_post_ra>
// kernel: tpu_custom_call.1
= control target key start
LH: loop header
LB: loop body
LE: loop exit
PB: predicated region body
PF: predicated region fallthrough
CT: control target
= control target key end

     0   :  { %9 = vsyncpa [#allocation3], 0  ;;  %s3108_s0 = inlined_call_operand.vmem [shape: f32[2,16,5], index: 0, kind: input, shape index: {}]   ;;  %s3109_s1 = inlined_call_operand.hbm [shape: f32[2,4,1024], index: 1, kind: input, shape index: {}]   ;;  %s3110_s2 = inlined_call_operand.hbm [shape: f32[2,16,1024], index: 2, kind: output, shape index: {0}]   ;;  %s3111_s3 = inlined_call_operand.hbm [shape: s32[2,4,1024], index: 3, kind: output, shape index: {1}]  }
   0x1   :  { %11 = vsyncpa [#allocation3 + $0x1], 0 }
   0x2   :  { %12 = vsyncpa [#allocation4], 0 }
   0x3   :  { %14 = vsyncpa [#allocation4 + $0x1], 0 }
   0x4   :  { %15 = vsyncpa [#allocation7], 0 }
   0x5   :  { %17 = vsyncpa [#allocation7 + $0x1], 0  ;;  %s1819_s12 = smov 0   ;;  %s1821_s13 = smov 0  }
   0x6   :  { %s1823_s14 = smov 0   ;;  %s1825_s15 = smov 0  }
   0x7   :  { %s1827_s16 = smov 0   ;;  %s1829_s17 = smov 0  }
   0x8 LB: > { %s1495_s18 = sadd.s32 4294967295, %s1788_s17   ;;  %s1496_s19 = sadd.s32 4294967294, %s1788_s17   ;;  %s1788_s17 = sphi %s1829_s17, %s23_s17   ;;  %s1784_s16 = sphi %s1827_s16, %s3208_s16   ;;  %s1780_s15 = sphi %s1825_s15, %s3207_s15   ;;  %s1776_s14 = sphi %s1823_s14, %s3206_s14   ;;  %s1772_s13 = sphi %s1821_s13, %s3205_s13   ;;  %s1768_s12 = sphi %s1819_s12, %s3204_s12  }
   0x9   : > { %s35_s20 = sadd.s32 1, %s1784_s16  ;;  %s70_s21 = sadd.s32 1, %s1776_s14 }
   0xa   : > { %p37_p0 = scmp.ge.s32.totalorder %s35_s20, 2  ;;  %p77_p1 = scmp.ne.s32.totalorder %s1776_s14, %s1772_s13 }
   0xb   : > { %p78_p2 = scmp.eq.s32.totalorder %s1788_s17, 0  ;;  %p83_p3 = scmp.ne.s32.totalorder %s1772_s13, %s1768_s12 }
   0xc   : > { %s3210_s20 = smov (%p37_p0, %s35_s20), 0  ;;  %p84_p5 = scmp.eq.s32.totalorder %s1495_s18, 0 }
   0xd   : > { %p1860_p4 = por %p78_p2, %p77_p1  ;;  %s65_s23 = ssub.s32 %s1784_s16, %s3210_s20 }
   0xe   : > { %p109_p6 = scmp.eq.s32.totalorder %s1495_s18, 1  ;;  %p68_p7 = scmp.eq.s32.totalorder %s65_s23, 0 }
   0xf   : > { %p1866_p8 = por %p84_p5, %p83_p3  ;;  %p115_p10 = scmp.eq.s32.totalorder %s1496_s19, 1 }
  0x10   : > { %p1870_p9 = por %p109_p6, %p77_p1  ;;  %p1498_p12 = scmp.ge.s32.totalorder %s1788_s17, 2 }
  0x11   : > { %s1875_s26 = scalar_select %p68_p7, %s1776_s14, %s70_s21  }
  0x12   : > { %p1877_p11 = por %p115_p10, %p83_p3  ;;  %p1540_p13 = scmp.lt.s32.totalorder %s1788_s17, 2 }
  0x13   : > { %s171_s28 = sand.u32 1, %s1776_s14   ;;  %s1519_s30 = sshll.u32 %s1784_s16, 5 }
  0x14   : > { %s1499_s29 = sshll.u32 %s171_s28, 5  ;;  %s182_s6 = scalar_lea.hbm %s3109_s1, %s1519_s30 }
  0x15   : > { %s175_s7 = scalar_lea.vmem [#allocation2], %s1499_s29  ;;  %s184_s9 = sshll.u32 %s182_s6, 4  ;;  %s185_s9 = int_to_ptr.hbm [resolvable:$true] %s184_s9 }
  0x16   : > { %s186_s8 = sshll.u32 %s175_s7, 4  ;;  %p1530_p0 = pnand %p1540_p13, %p1860_p4  ;;  %s187_s8 = int_to_ptr.vmem [resolvable:$true] %s186_s8 }
  0x17   : > { %p1502_p1 = scmp.ge.s32.totalorder %s1788_s17, 1  ;;  %p191_p2 = scmp.lt.s32.totalorder %s1788_s17, 3 }
  0x18   : > { %s172_s10 = scalar_lea.sflag [#allocation3], %s171_s28 }
  0x19   : > { %1532 = dma.hbm_to_vmem [thread:$0]  (!%p1530_p0), %s185_s9, 512, %s187_s8, %s172_s10  }
  0x1a   : > { %p192_p3 = pnand %p1502_p1, %p191_p2 }
  0x1c   : > { %195 = sbr.rel (%p192_p3) target bundleno = 569 (0x239), region = 28 }
  0x21   : > { %s1893_s11 = sand.u32 1, %s1772_s13  }
  0x22   : > { %s1503_s18 = sshll.u32 %s1893_s11, 5  ;;  %s198_s19 = scalar_lea.sflag [#allocation3], %s1893_s11 }
  0x23   : > { %s1899_s21 = scalar_lea.vmem [#allocation2], %s1503_s18 }
  0x24   : > { %1755 = dma.done.wait (%p1866_p8), %s198_s19, 512  }
  0x25   : > { %1757 = vsyncadd (%p1866_p8), %s198_s19, 4294966784  ;;  %p235_p4 = scmp.lt.s32.totalorder %s1780_s15, 1  ;;  %s1790_s4 = smov 2   ;;  %v3112_v2 = vmov 1   ;;  %v1792_v3 = vmov 3   ;;  %v1793_v4 = vmov 2  }
  0x26   : > { %1602 = vset.pattern.permute.xlu1 %v3112_v2  ;;  %1601 = vset.pattern.permute.xlu0 %v1792_v3  ;;  %v1794_v5 = vmov 0   ;;  %s1795_s24 = smov 127   ;;  %v1796_v10 = vmov 4   ;;  %v1930_v12 = vld [vmem:[%s1899_s21 + $0x2] ss:$4 sm:$0xff]  ;;  %s1504_s5 = sshll.u32 %s1893_s11, 7 }
  0x27   : > { %s236_s22 = scalar_select %p235_p4, %s1780_s15, 1  ;;  %1599 = vset.pattern.permute.xlu2 %v1793_v4  ;;  %v1933_v13 = vld [vmem:[%s1899_s21] ss:$4 sm:$0xff]  ;;  %v260_v14 = vperm.slane %v1930_v12, 0  ;;  %v261_v15 = vperm.slane %v1930_v12, 1  ;;  %v262_v16 = vperm.slane %v1930_v12, 2 }
  0x28   : > { %v263_v17 = vperm.slane %v1930_v12, 3  ;;  %v264_v18 = vperm.slane %v1930_v12, 4  ;;  %v265_v19 = vperm.slane %v1930_v12, 5  ;;  %v266_v20 = vperm.slane %v1930_v12, 6  ;;  %v1984_v59 = vld [vmem:[%s1899_s21 + $0x3] ss:$4 sm:$0xff] }
  0x29   : > { %s1520_s23 = sshll.u32 %s236_s22, 4  ;;  %v3122_v21 = vperm.slane %v1930_v12, 7  ;;  %v3121_v22 = vperm.slane %v1933_v13, 0  ;;  %v3120_v23 = vperm.slane %v1933_v13, 1  ;;  %v3119_v24 = vperm.slane %v1933_v13, 2  ;;  %s2511_s6 = scalar_lea.vmem [#allocation5], %s1504_s5 }
  0x2a   : > { %s239_s30 = scalar_lea.vmem %s3108_s0, %s1520_s23  ;;  %v3118_v25 = vperm.slane %v1933_v13, 3  ;;  %v3117_v26 = vperm.slane %v1933_v13, 4  ;;  %v3116_v27 = vperm.slane %v1933_v13, 5  ;;  %v3115_v28 = vperm.slane %v1933_v13, 6  ;;  %v1988_v60 = vld [vmem:[%s1899_s21 + $0x1] ss:$4 sm:$0xff] }
  0x2b   : > { %v1910_v0 = vld [vmem:[%s239_s30] sm:$0xff]  ;;  %v1913_v1 = vld [vmem:[%s239_s30 + $0x8] sm:$0xff]  ;;  %v3114_v29 = vperm.slane %v1933_v13, 7  ;;  %v340_v61 = vperm.slane %v1984_v59, 6  ;;  %v341_v62 = vperm.slane %v1984_v59, 7  ;;  %s1521_s7 = sshll.u32 %s1780_s15, 7 }
  0x2c   : > { %411 = vrot.lane.b32.xlu0 %v1910_v0, %s1790_s4  ;;  %256 = vperm.xlu2 %1599, %v1910_v0   ;;  %s2726_s10 = scalar_lea.hbm %s3110_s2, %s1521_s7  ;;  %s1340_s19 = sshll.u32 %s2511_s6, 4  ;;  %s2771_s19 = int_to_ptr.vmem [resolvable:$true] %s1340_s19 }
  0x2d   : > { %s1342_s21 = sshll.u32 %s2726_s10, 4  ;;  %s1321_s22 = scalar_lea.sflag [#allocation4], %s1893_s11  ;;  %s2773_s21 = int_to_ptr.hbm [resolvable:$true] %s1342_s21 }
  0x2e   : > { %s1688_s23 = sshra.s32 %s2773_s21, 4  ;;  %s1689_s23 = int_to_ptr.hbm [resolvable:$true] %s1688_s23 }
  0x2f   : > { %s1690_s28 = scalar_lea.hbm %s1689_s23, 128  ;;  %p1695_p8 = scmp.lt.s32.totalorder %s1689_s23, %s3110_s2 }
  0x30   : > { %p1691_p5 = scmp.ne.s32.totalorder %s1689_s23, %s1690_s28 }
  0x32   : > { %p1692_p6 = pnand %p1691_p5, %p1870_p9 }
  0x34   : > { %855 = vrot.lane.b32.xlu0 %v1913_v1, %s1790_s4  ;;  %1600 = vset.pattern.permute.xlu2 %v1794_v5  ;;  %p1693_p7 = pneg %p1692_p6  ;;  %s1694_s4 = scalar_lea.hbm %s3110_s2, 256 }
  0x35   : > { %285 = vperm.xlu2 %1600, %v1910_v0   ;;  %p1696_p10 = scmp.lt.s32.totalorder %s1694_s4, %s1690_s28 }
  0x37   : > { %p1697_p13 = por %p1696_p10, %p1695_p8 }
  0x39   : > { %p1698_p0 = pnand %p1697_p13, %p1693_p7 }
  0x3c   : > { %330 = vperm.xlu0 %1601, %v1910_v0  }
  0x3d   : > { %1603 = vset.pattern.permute.xlu2 %v1793_v4 }
  0x3e   : > { %768 = vperm.xlu2 %1603, %v1913_v1  }
  0x44   : > { %1606 = vset.pattern.permute.xlu0 %v3112_v2 }
  0x45   : > { %820 = vperm.xlu0 %1606, %v1913_v1  }
  0x46   : > { %1605 = vset.pattern.permute.xlu2 %v1792_v3  ;;  %v369_v3 = vperm.slane %v1988_v60, 6 }
  0x47   : > { %808 = vperm.xlu2 %1605, %v1913_v1  }
  0x4d   : > { %1611 = vset.pattern.permute.xlu0 %v1796_v10 }
  0x4f   : > { %1608 = vset.pattern.permute.xlu2 %v1793_v4 }
  0x86   : > { %v257_v11 = vpop.permute.xlu2 %256 }
  0x87   : > { %v276_v30 = vmin.f32 %v257_v11, %v260_v14  ;;  %v277_v31 = vmin.f32 %v257_v11, %v261_v15  ;;  %v278_v32 = vmin.f32 %v257_v11, %v262_v16  ;;  %v279_v33 = vmin.f32 %v257_v11, %v263_v17 }
  0x88   : > { %v280_v34 = vmin.f32 %v257_v11, %v264_v18  ;;  %v281_v35 = vmin.f32 %v257_v11, %v265_v19  ;;  %v282_v36 = vmin.f32 %v257_v11, %v266_v20  ;;  %v283_v37 = vmin.f32 %v257_v11, %v3122_v21 }
  0x8f   : > { %v286_v38 = vpop.permute.xlu2 %285 }
  0x90   : > { %v305_v39 = vmax.f32 %v286_v38, %v3121_v22  ;;  %v306_v40 = vmax.f32 %v286_v38, %v3120_v23  ;;  %v307_v41 = vmax.f32 %v286_v38, %v3119_v24  ;;  %v308_v42 = vmax.f32 %v286_v38, %v3118_v25 }
  0x91   : > { %v309_v43 = vmax.f32 %v286_v38, %v3117_v26  ;;  %v310_v44 = vmax.f32 %v286_v38, %v3116_v27  ;;  %v311_v45 = vmax.f32 %v286_v38, %v3115_v28  ;;  %v312_v46 = vmax.f32 %v286_v38, %v3114_v29 }
  0x92   : > { %v313_v47 = vsub.f32 %v276_v30, %v305_v39  ;;  %v314_v48 = vsub.f32 %v277_v31, %v306_v40  ;;  %v315_v49 = vsub.f32 %v278_v32, %v307_v41  ;;  %v316_v50 = vsub.f32 %v279_v33, %v308_v42 }
  0x93   : > { %v317_v52 = vsub.f32 %v280_v34, %v309_v43  ;;  %v318_v53 = vsub.f32 %v281_v35, %v310_v44  ;;  %v319_v54 = vsub.f32 %v282_v36, %v311_v45  ;;  %v320_v55 = vsub.f32 %v283_v37, %v312_v46 }
  0x94   : > { %v334_v37 = vperm.slane %v1984_v59, 0  ;;  %v335_v38 = vperm.slane %v1984_v59, 1  ;;  %v336_v39 = vperm.slane %v1984_v59, 2  ;;  %v2011_v40 = vmax.f32 %v314_v48, 0.0 }
  0x95   : > { %v327_v30 = vmax.f32 %v319_v54, 0.0  ;;  %v328_v32 = vmax.f32 %v320_v55, 0.0  ;;  %v338_v41 = vperm.slane %v1984_v59, 4  ;;  %v339_v42 = vperm.slane %v1984_v59, 5 }
  0x96   : > { %v2015_v43 = vmax.f32 %v315_v49, 0.0  ;;  %v2017_v44 = vmax.f32 %v316_v50, 0.0  ;;  %v2019_v45 = vmax.f32 %v317_v52, 0.0  ;;  %v2021_v46 = vmax.f32 %v318_v53, 0.0 }
  0x97   : > { %v364_v49 = vperm.slane %v1988_v60, 1  ;;  %v365_v50 = vperm.slane %v1988_v60, 2  ;;  %v366_v52 = vperm.slane %v1988_v60, 3 }
  0x98   : > { %v769_v35 = vpop.permute.xlu2 %768 }
  0x99   : > { %v771_v23 = vmin.f32 %v769_v35, %v260_v14  ;;  %v772_v22 = vmin.f32 %v769_v35, %v261_v15  ;;  %v773_v21 = vmin.f32 %v769_v35, %v262_v16  ;;  %v3137_v14 = vperm.slane %v1930_v12, 7 }
  0x9e   : > { %v412_v6 = vpop.permute.xlu0 %411 }
  0x9f   : > { %v414_v7 = vsub.f32 %v1910_v0, %v412_v6 }
  0xa1   : > { %416 = vrot.lane.b32.xlu1 %v414_v7, %s1795_s24 }
  0xa6   : > { %v856_v8 = vpop.permute.xlu0 %855 }
  0xa7   : > { %v858_v9 = vsub.f32 %v1913_v1, %v856_v8 }
  0xa9   : > { %860 = vrot.lane.b32.xlu1 %v858_v9, %s1795_s24 }
  0xae   : > { %v331_v63 = vpop.permute.xlu0 %330 }
  0xaf   : > { %v356_v6 = vmin.f32 %v331_v63, %v340_v61  ;;  %v2025_v54 = vmin.f32 %v331_v63, %v335_v38  ;;  %v2037_v53 = vmin.f32 %v331_v63, %v339_v42 }
  0xb1   : > { %359 = vperm.xlu1 %1602, %v1910_v0  }
  0xb7   : > { %v821_v55 = vpop.permute.xlu0 %820 }
  0xb9   : > { %1604 = vset.pattern.permute.xlu1 %v1794_v5 }
  0xba   : > { %780 = vperm.xlu1 %1604, %v1913_v1  }
  0xc2   : > { %1607 = vset.pattern.permute.xlu1 %v1793_v4  ;;  %v370_v4 = vperm.slane %v1988_v60, 7 }
 0x113   : > { %v417_v51 = vpop.permute.xlu1 %416 }
 0x114   : > { %v419_v56 = vmul.f32 %v417_v51, %v414_v7  ;;  %v357_v7 = vmin.f32 %v331_v63, %v341_v62  ;;  %v2023_v51 = vmin.f32 %v331_v63, %v334_v37 }
 0x116   : > { %422 = vperm.xlu1 %1607, %v419_v56   ;;  %v363_v56 = vperm.slane %v1988_v60, 0 }
 0x11b   : > { %v861_v57 = vpop.permute.xlu1 %860 }
 0x11c   : > { %v863_v58 = vmul.f32 %v861_v57, %v858_v9  ;;  %v2035_v57 = vmin.f32 %v331_v63, %v338_v41 }
 0x11e   : > { %866 = vperm.xlu2 %1608, %v863_v58   ;;  %1609 = vset.pattern.permute.xlu1 %v1796_v10  ;;  %v367_v58 = vperm.slane %v1988_v60, 4 }
 0x11f   : > { %659 = vperm.xlu1 %1609, %v1910_v0  }
 0x123   : > { %v1995_v5 = vpop.permute.xlu1 %359 }
 0x124   : > { %v385_v8 = vmax.f32 %v1995_v5, %v369_v3  ;;  %v386_v9 = vmax.f32 %v1995_v5, %v370_v4 }
 0x126   : > { %1610 = vset.pattern.permute.xlu2 %v1796_v10  ;;  %v393_v0 = vsub.f32 %v356_v6, %v385_v8  ;;  %v394_v11 = vsub.f32 %v357_v7, %v386_v9  ;;  %v337_v10 = vperm.slane %v1984_v59, 3  ;;  %v368_v6 = vperm.slane %v1988_v60, 5 }
 0x127   : > { %1086 = vperm.xlu2 %1610, %v1913_v1   ;;  %v2009_v1 = vmax.f32 %v313_v47, 0.0  ;;  %v2027_v47 = vmin.f32 %v331_v63, %v336_v39  ;;  %v823_v7 = vmax.f32 %v821_v55, %v363_v56  ;;  %v824_v8 = vmax.f32 %v821_v55, %v364_v49 }
 0x128   : > { %v401_v31 = vmax.f32 %v393_v0, 0.0  ;;  %v402_v33 = vmax.f32 %v394_v11, 0.0  ;;  %v2029_v48 = vmin.f32 %v331_v63, %v337_v10  ;;  %v825_v9 = vmax.f32 %v821_v55, %v365_v50  ;;  %v809_v11 = vpop.permute.xlu2 %808 }
 0x129   : > { %v826_v0 = vmax.f32 %v821_v55, %v366_v52  ;;  %v811_v2 = vmin.f32 %v809_v11, %v334_v37  ;;  %v812_v29 = vmin.f32 %v809_v11, %v335_v38  ;;  %v813_v28 = vmin.f32 %v809_v11, %v336_v39 }
 0x12a   : > { %v2001_v34 = vmul.f32 %v401_v31, %v327_v30  ;;  %v2003_v36 = vmul.f32 %v402_v33, %v328_v32  ;;  %v827_v30 = vmax.f32 %v821_v55, %v367_v58  ;;  %v828_v31 = vmax.f32 %v821_v55, %v368_v6 }
 0x12b   : > { %v829_v32 = vmax.f32 %v821_v55, %v369_v3  ;;  %v830_v33 = vmax.f32 %v821_v55, %v370_v4  ;;  %v814_v27 = vmin.f32 %v809_v11, %v337_v10  ;;  %v815_v26 = vmin.f32 %v809_v11, %v338_v41 }
 0x12c   : > { %3135 = vst [vmem:[#allocation11_spill] sm:$0xff] %v2001_v34  ;;  %v816_v63 = vmin.f32 %v809_v11, %v339_v42  ;;  %v817_v25 = vmin.f32 %v809_v11, %v340_v61  ;;  %v818_v24 = vmin.f32 %v809_v11, %v341_v62  ;;  %v774_v3 = vmin.f32 %v769_v35, %v263_v17  ;;  %v781_v38 = vpop.permute.xlu1 %780 }
 0x12d   : > { %3136 = vst [vmem:[#allocation12_spill] sm:$0xff] %v2003_v36  ;;  %v775_v4 = vmin.f32 %v769_v35, %v264_v18  ;;  %v776_v37 = vmin.f32 %v769_v35, %v265_v19  ;;  %v777_v61 = vmin.f32 %v769_v35, %v266_v20  ;;  %v778_v62 = vmin.f32 %v769_v35, %v3137_v14 }
 0x12e   : > { %v831_v15 = vsub.f32 %v811_v2, %v823_v7  ;;  %v832_v39 = vsub.f32 %v812_v29, %v824_v8  ;;  %v833_v10 = vsub.f32 %v813_v28, %v825_v9  ;;  %v834_v16 = vsub.f32 %v814_v27, %v826_v0 }
 0x12f   : > { %v835_v41 = vsub.f32 %v815_v26, %v827_v30  ;;  %v836_v42 = vsub.f32 %v816_v63, %v828_v31  ;;  %v837_v17 = vsub.f32 %v817_v25, %v829_v32  ;;  %v838_v55 = vsub.f32 %v818_v24, %v830_v33 }
 0x130   : > { %v2058_v18 = vmax.f32 %v1995_v5, %v363_v56  ;;  %v2061_v19 = vmax.f32 %v1995_v5, %v364_v49  ;;  %v2064_v20 = vmax.f32 %v1995_v5, %v365_v50  ;;  %v2067_v35 = vmax.f32 %v1995_v5, %v366_v52 }
 0x131   : > { %v3138_v2 = vperm.slane %v1933_v13, 0  ;;  %v3139_v26 = vperm.slane %v1933_v13, 1  ;;  %v3140_v24 = vperm.slane %v1933_v13, 2  ;;  %v3141_v29 = vperm.slane %v1933_v13, 3 }
 0x132   : > { %v3142_v49 = vperm.slane %v1933_v13, 4  ;;  %v3143_v50 = vperm.slane %v1933_v13, 5  ;;  %v3144_v52 = vperm.slane %v1933_v13, 6  ;;  %v3145_v0 = vperm.slane %v1933_v13, 7 }
 0x133   : > { %v783_v28 = vmax.f32 %v781_v38, %v3138_v2  ;;  %v784_v27 = vmax.f32 %v781_v38, %v3139_v26  ;;  %v785_v25 = vmax.f32 %v781_v38, %v3140_v24  ;;  %v786_v56 = vmax.f32 %v781_v38, %v3141_v29 }
 0x134   : > { %v787_v7 = vmax.f32 %v781_v38, %v3142_v49  ;;  %v788_v8 = vmax.f32 %v781_v38, %v3143_v50  ;;  %v789_v9 = vmax.f32 %v781_v38, %v3144_v52  ;;  %v790_v11 = vmax.f32 %v781_v38, %v3145_v0 }
 0x135   : > { %v2086_v30 = vmax.f32 %v1995_v5, %v367_v58  ;;  %v2089_v31 = vmax.f32 %v1995_v5, %v368_v6  ;;  %v250_v32 = vsub.f32 %v1930_v12, %v1933_v13  ;;  %v251_v33 = vsub.f32 %v1984_v59, %v1988_v60 }
 0x136   : > { %v839_v58 = vmax.f32 %v831_v15, 0.0  ;;  %v791_v2 = vsub.f32 %v771_v23, %v783_v28  ;;  %v792_v26 = vsub.f32 %v772_v22, %v784_v27  ;;  %v793_v5 = vsub.f32 %v773_v21, %v785_v25 }
 0x137   : > { %v794_v6 = vsub.f32 %v774_v3, %v786_v56  ;;  %v795_v24 = vsub.f32 %v775_v4, %v787_v7  ;;  %v796_v29 = vsub.f32 %v776_v37, %v788_v8  ;;  %v797_v12 = vsub.f32 %v777_v61, %v789_v9 }
 0x138   : > { %v798_v13 = vsub.f32 %v778_v62, %v790_v11  ;;  %v840_v49 = vmax.f32 %v832_v39, 0.0  ;;  %v841_v59 = vmax.f32 %v833_v10, 0.0  ;;  %v842_v60 = vmax.f32 %v834_v16, 0.0 }
 0x139   : > { %v2101_v50 = vmul.f32 %v251_v33, %v250_v32  ;;  %v843_v52 = vmax.f32 %v835_v41, 0.0  ;;  %v844_v0 = vmax.f32 %v836_v42, 0.0  ;;  %v845_v14 = vmax.f32 %v837_v17, 0.0 }
 0x13a   : > { %v846_v63 = vmax.f32 %v838_v55, 0.0  ;;  %v799_v36 = vmax.f32 %v791_v2, 0.0  ;;  %v800_v38 = vmax.f32 %v792_v26, 0.0  ;;  %v801_v15 = vmax.f32 %v793_v5, 0.0 }
 0x13b   : > { %v802_v23 = vmax.f32 %v794_v6, 0.0  ;;  %v803_v22 = vmax.f32 %v795_v24, 0.0  ;;  %v804_v21 = vmax.f32 %v796_v29, 0.0  ;;  %v805_v3 = vmax.f32 %v797_v12, 0.0 }
 0x13c   : > { %v806_v4 = vmax.f32 %v798_v13, 0.0  ;;  %v426_v37 = vperm.slane %v2101_v50, 0  ;;  %v427_v61 = vperm.slane %v2101_v50, 1  ;;  %v428_v62 = vperm.slane %v2101_v50, 2 }
 0x13d   : > { %v429_v39 = vperm.slane %v2101_v50, 3  ;;  %v430_v10 = vperm.slane %v2101_v50, 4  ;;  %v431_v16 = vperm.slane %v2101_v50, 5  ;;  %v432_v41 = vperm.slane %v2101_v50, 6 }
 0x13e   : > { %v433_v42 = vperm.slane %v2101_v50, 7  ;;  %v2111_v17 = vmul.f32 %v839_v58, %v799_v36  ;;  %v2113_v55 = vmul.f32 %v840_v49, %v800_v38  ;;  %v2115_v28 = vmul.f32 %v841_v59, %v801_v15 }
 0x13f   : > { %v2117_v27 = vmul.f32 %v842_v60, %v802_v23  ;;  %v2119_v25 = vmul.f32 %v843_v52, %v803_v22  ;;  %v2121_v56 = vmul.f32 %v844_v0, %v804_v21  ;;  %v2123_v7 = vmul.f32 %v845_v14, %v805_v3 }
 0x140   : > { %v2125_v8 = vmul.f32 %v846_v63, %v806_v4  ;;  %v390_v24 = vsub.f32 %v2029_v48, %v2067_v35  ;;  %v391_v29 = vsub.f32 %v2035_v57, %v2086_v30  ;;  %v392_v59 = vsub.f32 %v2037_v53, %v2089_v31 }
 0x141   : > { %v3146_v60 = vsub.f32 %v2023_v51, %v2058_v18  ;;  %v3147_v57 = vsub.f32 %v2025_v54, %v2061_v19  ;;  %v3148_v15 = vsub.f32 %v2027_v47, %v2064_v20 }
 0x142   : > { %v398_v31 = vmax.f32 %v390_v24, 0.0  ;;  %v399_v18 = vmax.f32 %v391_v29, 0.0  ;;  %v400_v54 = vmax.f32 %v392_v59, 0.0 }
 0x143   : > { %v395_v52 = vmax.f32 %v3146_v60, 0.0  ;;  %v396_v35 = vmax.f32 %v3147_v57, 0.0  ;;  %v397_v53 = vmax.f32 %v3148_v15, 0.0 }
 0x145   : > { %v2185_v20 = vmul.f32 %v395_v52, %v2009_v1  ;;  %v2191_v3 = vmul.f32 %v396_v35, %v2011_v40  ;;  %v2194_v4 = vmul.f32 %v397_v53, %v2015_v43  ;;  %v2204_v1 = vmul.f32 %v400_v54, %v2021_v46 }
 0x147   : > { %3149 = vst [vmem:[#allocation13_spill] sm:$0xff] %v2185_v20 }
 0x148   : > { %3150 = vst [vmem:[#allocation14_spill] sm:$0xff] %v2191_v3 }
 0x149   : > { %3151 = vst [vmem:[#allocation15_spill] sm:$0xff] %v2194_v4 }
 0x14a   : > { %3154 = vst [vmem:[#allocation18_spill] sm:$0xff] %v2204_v1 }
 0x178   : > { %v867_v9 = vpop.permute.xlu2 %866 }
 0x179   : > { %v869_v11 = vadd.f32 %v867_v9, %v426_v37  ;;  %v870_v36 = vadd.f32 %v867_v9, %v427_v61  ;;  %v871_v32 = vadd.f32 %v867_v9, %v428_v62  ;;  %v872_v33 = vadd.f32 %v867_v9, %v429_v39 }
 0x17a   : > { %v873_v38 = vadd.f32 %v867_v9, %v430_v10  ;;  %v874_v63 = vadd.f32 %v867_v9, %v431_v16  ;;  %v875_v14 = vadd.f32 %v867_v9, %v432_v41  ;;  %v876_v58 = vadd.f32 %v867_v9, %v433_v42 }
 0x17b   : > { %v877_v2 = vsub.f32 %v869_v11, %v2111_v17  ;;  %v878_v26 = vsub.f32 %v870_v36, %v2113_v55  ;;  %v879_v5 = vsub.f32 %v871_v32, %v2115_v28  ;;  %v880_v6 = vsub.f32 %v872_v33, %v2117_v27 }
 0x17c   : > { %v881_v12 = vsub.f32 %v873_v38, %v2119_v25  ;;  %v882_v13 = vsub.f32 %v874_v63, %v2121_v56  ;;  %v883_v49 = vsub.f32 %v875_v14, %v2123_v7  ;;  %v884_v48 = vsub.f32 %v876_v58, %v2125_v8 }
 0x17d   : > { %vm885_vm0 = vcmp.gt.f32.partialorder %v877_v2, 0.0  ;;  %vm886_vm1 = vcmp.gt.f32.partialorder %v878_v26, 0.0  ;;  %vm887_vm2 = vcmp.gt.f32.partialorder %v879_v5, 0.0  ;;  %vm888_vm3 = vcmp.gt.f32.partialorder %v880_v6, 0.0 }
 0x17e   : > { %vm889_vm4 = vcmp.gt.f32.partialorder %v881_v12, 0.0  ;;  %v2163_v30 = vsel %vm885_vm0, %v877_v2, 1.0  ;;  %v2165_v0 = vsel %vm886_vm1, %v878_v26, 1.0  ;;  %vm890_vm5 = vcmp.gt.f32.partialorder %v882_v13, 0.0 }
 0x17f   : > { %v2170_v51 = vsel %vm887_vm2, %v879_v5, 1.0  ;;  %vm891_vm6 = vcmp.gt.f32.partialorder %v883_v49, 0.0  ;;  %v2172_v23 = vsel %vm888_vm3, %v880_v6, 1.0  ;;  %1612 = vrcp.f32 %v2163_v30 }
 0x180   : > { %vm892_vm7 = vcmp.gt.f32.partialorder %v884_v48, 0.0  ;;  %v2175_v19 = vsel %vm889_vm4, %v881_v12, 1.0  ;;  %1614 = vrcp.f32 %v2165_v0  ;;  %v2178_v22 = vsel %vm890_vm5, %v882_v13, 1.0 }
 0x181   : > { %1616 = vrcp.f32 %v2170_v51  ;;  %v2181_v47 = vsel %vm891_vm6, %v883_v49, 1.0  ;;  %v2187_v21 = vsel %vm892_vm7, %v884_v48, 1.0  ;;  %v2198_v9 = vmul.f32 %v398_v31, %v2017_v44 }
 0x182   : > { %1618 = vrcp.f32 %v2172_v23  ;;  %v2201_v11 = vmul.f32 %v399_v18, %v2019_v45  ;;  %v912_v32 = vand.u32 2147483648, %v2163_v30  ;;  %v926_v40 = vand.u32 2147483648, %v2165_v0 }
 0x183   : > { %1620 = vrcp.f32 %v2175_v19  ;;  %3152 = vst [vmem:[#allocation16_spill] sm:$0xff] %v2198_v9  ;;  %v940_v43 = vand.u32 2147483648, %v2170_v51  ;;  %v910_v12 = vand.u32 2147483647, %v2163_v30  ;;  %v924_v52 = vand.u32 2147483647, %v2165_v0 }
 0x184   : > { %1622 = vrcp.f32 %v2178_v22  ;;  %3153 = vst [vmem:[#allocation17_spill] sm:$0xff] %v2201_v11  ;;  %v2239_v60 = vor.u32 1.1754944e-38, %v912_v32  ;;  %v2248_v57 = vor.u32 1.1754944e-38, %v926_v40  ;;  %v938_v35 = vand.u32 2147483647, %v2170_v51 }
 0x185   : > { %v2206_v36 = vpop.eup %1612  ;;  %1624 = vrcp.f32 %v2181_v47  ;;  %vm906_vm13 = vweird.f32 %v2163_v30  ;;  %vm920_vm15 = vweird.f32 %v2165_v0  ;;  %vm934_vm2 = vweird.f32 %v2170_v51 }
 0x186   : > { %v2212_v33 = vpop.eup %1614  ;;  %v902_v44 = vmul.f32 %v2206_v36, %v2163_v30  ;;  %1626 = vrcp.f32 %v2187_v21  ;;  %vm907_vm10 = vweird.f32 %v2206_v36  ;;  %vm2298_vm4 = vcmp.eq.f32.partialorder %v910_v12, 8.507059e+37 }
 0x187   : > { %v2219_v63 = vpop.eup %1616  ;;  %v916_v14 = vmul.f32 %v2212_v33, %v2165_v0  ;;  %vm948_vm5 = vweird.f32 %v2172_v23  ;;  %vm908_vm6 = vmor %vm906_vm13, %vm907_vm10  ;;  %vm921_vm7 = vweird.f32 %v2212_v33  ;;  %vm976_vm13 = vweird.f32 %v2178_v22 }
 0x188   : > { %v423_v38 = vpop.permute.xlu1 %422  ;;  %v2226_v5 = vpop.eup %1618  ;;  %v930_v6 = vmul.f32 %v2219_v63, %v2170_v51  ;;  %v903_v49 = vsub.f32 1.0, %v902_v44  ;;  %vm935_vm10 = vweird.f32 %v2219_v63 }
 0x189   : > { %v442_v24 = vadd.f32 %v426_v37, %v423_v38  ;;  %v443_v29 = vadd.f32 %v427_v61, %v423_v38  ;;  %v2235_v13 = vpop.eup %1620  ;;  %v444_v59 = vadd.f32 %v428_v62, %v423_v38  ;;  %v445_v37 = vadd.f32 %v429_v39, %v423_v38 }
 0x18a   : > { %v2242_v48 = vpop.eup %1622  ;;  %v446_v61 = vadd.f32 %v430_v10, %v423_v38  ;;  %v917_v53 = vsub.f32 1.0, %v916_v14  ;;  %v944_v62 = vmul.f32 %v2226_v5, %v2172_v23  ;;  %v447_v31 = vadd.f32 %v431_v16, %v423_v38 }
 0x18b   : > { %v2251_v15 = vpop.eup %1624  ;;  %v448_v18 = vadd.f32 %v432_v41, %v423_v38  ;;  %v931_v54 = vsub.f32 1.0, %v930_v6  ;;  %v449_v10 = vadd.f32 %v433_v42, %v423_v38  ;;  %v450_v32 = vsub.f32 %v442_v24, %v2185_v20 }
 0x18c   : > { %v2259_v39 = vpop.eup %1626  ;;  %v451_v40 = vsub.f32 %v443_v29, %v2191_v3  ;;  %v904_v44 = vmul.f32 %v2206_v36, %v903_v49  ;;  %v958_v14 = vmul.f32 %v2235_v13, %v2175_v19  ;;  %v972_v16 = vmul.f32 %v2242_v48, %v2178_v22  ;;  %v1087_v3 = vpop.permute.xlu2 %1086 }
 0x18d   : > { %v452_v41 = vsub.f32 %v444_v59, %v2194_v4  ;;  %v986_v6 = vmul.f32 %v2251_v15, %v2181_v47  ;;  %v1000_v50 = vmul.f32 %v2259_v39, %v2187_v21  ;;  %v453_v42 = vsub.f32 %v445_v37, %v2198_v9  ;;  %v3155_v59 = vld [vmem:[#allocation12_spill] sm:$0xff] }
 0x18e   : > { %v454_v38 = vsub.f32 %v446_v61, %v2201_v11  ;;  %v918_v24 = vmul.f32 %v2212_v33, %v917_v53  ;;  %v945_v29 = vsub.f32 1.0, %v944_v62  ;;  %v455_v49 = vsub.f32 %v447_v31, %v2204_v1 }
 0x18f   : > { %v456_v26 = vsub.f32 %v448_v18, %v2001_v34  ;;  %v932_v2 = vmul.f32 %v2219_v63, %v931_v54  ;;  %v457_v58 = vsub.f32 %v449_v10, %v3155_v59  ;;  %vm458_vm8 = vcmp.gt.f32.partialorder %v450_v32, 0.0 }
 0x190   : > { %vm459_vm9 = vcmp.gt.f32.partialorder %v451_v40, 0.0  ;;  %v959_v46 = vsub.f32 1.0, %v958_v14  ;;  %v973_v45 = vsub.f32 1.0, %v972_v16  ;;  %vm460_vm11 = vcmp.gt.f32.partialorder %v452_v41, 0.0 }
 0x191   : > { %vm461_vm12 = vcmp.gt.f32.partialorder %v453_v42, 0.0  ;;  %v987_v37 = vsub.f32 1.0, %v986_v6  ;;  %v1001_v61 = vsub.f32 1.0, %v1000_v50  ;;  %vm462_vm14 = vcmp.gt.f32.partialorder %v454_v38, 0.0 }
 0x192   : > { %v2284_v53 = vsel %vm458_vm8, %v450_v32, 1.0  ;;  %vm463_vm0 = vcmp.gt.f32.partialorder %v455_v49, 0.0  ;;  %vm464_vm1 = vcmp.gt.f32.partialorder %v456_v26, 0.0  ;;  %v2287_v62 = vsel %vm459_vm9, %v451_v40, 1.0  ;;  %vm922_vm9 = vmor %vm920_vm15, %vm921_vm7 }
 0x193   : > { %v2289_v31 = vsel %vm460_vm11, %v452_v41, 1.0  ;;  %v2293_v18 = vmul.f32 %v2226_v5, %v945_v29  ;;  %vm465_vm3 = vcmp.gt.f32.partialorder %v457_v58, 0.0  ;;  %v2295_v54 = vsel %vm461_vm12, %v453_v42, 1.0  ;;  %vm2379_vm12 = vmor %vm934_vm2, %vm935_vm10 }
 0x194   : > { %1628 = vrcp.f32 %v2284_v53  ;;  %v2303_v32 = vmul.f32 %v2235_v13, %v959_v46  ;;  %v2306_v40 = vmul.f32 %v2242_v48, %v973_v45  ;;  %v2308_v14 = vsel %vm462_vm14, %v454_v38, 1.0 }
 0x195   : > { %1630 = vrcp.f32 %v2287_v62  ;;  %v2312_v16 = vmul.f32 %v2251_v15, %v987_v37  ;;  %v2314_v41 = vsel %vm463_vm0, %v455_v49, 1.0  ;;  %v2316_v6 = vsel %vm464_vm1, %v456_v26, 1.0 }
 0x196   : > { %1632 = vrcp.f32 %v2289_v31  ;;  %v2320_v12 = vmul.f32 %v2259_v39, %v1001_v61  ;;  %v2322_v46 = vsel %vm465_vm3, %v457_v58, 1.0  ;;  %v905_v61 = vadd.f32 %v2206_v36, %v904_v44 }
 0x197   : > { %1634 = vrcp.f32 %v2295_v54  ;;  %v919_v38 = vadd.f32 %v2212_v33, %v918_v24  ;;  %vm2353_vm8 = vcmp.eq.f32.partialorder %v924_v52, 8.507059e+37  ;;  %v933_v30 = vadd.f32 %v2219_v63, %v932_v2 }
 0x198   : > { %1636 = vrcp.f32 %v2308_v14  ;;  %v909_v58 = vsel %vm908_vm6, %v2206_v36, %v905_v61  ;;  %vm962_vm11 = vweird.f32 %v2175_v19  ;;  %vm939_vm14 = vcmp.eq.f32.partialorder %v938_v35, 8.507059e+37 }
 0x199   : > { %1638 = vrcp.f32 %v2314_v41  ;;  %v2374_v45 = vsel %vm2298_vm4, %v2239_v60, %v909_v58  ;;  %v923_v0 = vsel %vm922_vm9, %v2212_v33, %v919_v38  ;;  %v937_v33 = vsel %vm2379_vm12, %v2219_v63, %v933_v30 }
 0x19a   : > { %v2334_v49 = vpop.eup %1628  ;;  %1640 = vrcp.f32 %v2316_v6  ;;  %v2390_v10 = vsel %vm2353_vm8, %v2248_v57, %v923_v0  ;;  %vm990_vm15 = vweird.f32 %v2181_v47  ;;  %vm1004_vm0 = vweird.f32 %v2187_v21 }
 0x19b   : > { %v2340_v42 = vpop.eup %1630  ;;  %v475_v26 = vmul.f32 %v2334_v49, %v2284_v53  ;;  %1642 = vrcp.f32 %v2322_v46  ;;  %vm949_vm1 = vweird.f32 %v2226_v5  ;;  %v952_v34 = vand.u32 2147483647, %v2172_v23 }
 0x19c   : > { %v2357_v24 = vpop.eup %1632  ;;  %v489_v37 = vmul.f32 %v2340_v42, %v2287_v62  ;;  %vm950_vm2 = vmor %vm948_vm5, %vm949_vm1  ;;  %vm963_vm4 = vweird.f32 %v2235_v13  ;;  %vm977_vm6 = vweird.f32 %v2242_v48  ;;  %vm991_vm9 = vweird.f32 %v2251_v15 }
 0x19d   : > { %v2366_v29 = vpop.eup %1634  ;;  %v476_v52 = vsub.f32 1.0, %v475_v26  ;;  %v503_v50 = vmul.f32 %v2357_v24, %v2289_v31  ;;  %vm953_vm3 = vcmp.eq.f32.partialorder %v952_v34, 8.507059e+37  ;;  %vm964_vm5 = vmor %vm962_vm11, %vm963_vm4  ;;  %v980_v34 = vand.u32 2147483647, %v2178_v22 }
 0x19e   : > { %v2383_v2 = vpop.eup %1636  ;;  %v490_v61 = vsub.f32 1.0, %v489_v37  ;;  %v517_v26 = vmul.f32 %v2366_v29, %v2295_v54  ;;  %vm978_vm8 = vmor %vm976_vm13, %vm977_vm6  ;;  %vm1005_vm13 = vweird.f32 %v2259_v39 }
 0x19f   : > { %v2395_v60 = vpop.eup %1638  ;;  %v2399_v38 = vmul.f32 %v2334_v49, %v476_v52  ;;  %v504_v58 = vsub.f32 1.0, %v503_v50  ;;  %v531_v37 = vmul.f32 %v2383_v2, %v2308_v14  ;;  %v941_v50 = vor.u32 1.1754944e-38, %v940_v43  ;;  %vm992_vm11 = vmor %vm990_vm15, %vm991_vm9 }
 0x1a0   : > { %v2405_v57 = vpop.eup %1640  ;;  %v2409_v63 = vmul.f32 %v2340_v42, %v490_v61  ;;  %v518_v44 = vsub.f32 1.0, %v517_v26  ;;  %v545_v30 = vmul.f32 %v2395_v60, %v2314_v41  ;;  %v947_v61 = vadd.f32 %v2226_v5, %v2293_v18 }
 0x1a1   : > { %v2415_v52 = vpop.eup %1642  ;;  %v2418_v0 = vmul.f32 %v2357_v24, %v504_v58  ;;  %v532_v35 = vsub.f32 1.0, %v531_v37  ;;  %v559_v36 = vmul.f32 %v2405_v57, %v2316_v6  ;;  %v942_v43 = vsel %vm939_vm14, %v941_v50, %v937_v33  ;;  %vm1006_vm14 = vmor %vm1004_vm0, %vm1005_vm13 }
 0x1a2   : > { %v2425_v26 = vmul.f32 %v2366_v29, %v518_v44  ;;  %v546_v59 = vsub.f32 1.0, %v545_v30  ;;  %v573_v51 = vmul.f32 %v2415_v52, %v2322_v46  ;;  %v3162_v30 = vand.u32 2147483648, %v2172_v23 }
 0x1a3   : > { %v2431_v58 = vmul.f32 %v2383_v2, %v532_v35  ;;  %v560_v37 = vsub.f32 1.0, %v559_v36  ;;  %v961_v50 = vadd.f32 %v2235_v13, %v2303_v32  ;;  %v951_v36 = vsel %vm950_vm2, %v2226_v5, %v947_v61 }
 0x1a4   : > { %v2436_v18 = vmul.f32 %v2395_v60, %v546_v59  ;;  %v574_v44 = vsub.f32 1.0, %v573_v51  ;;  %v955_v33 = vor.u32 1.1754944e-38, %v3162_v30  ;;  %v966_v23 = vand.u32 2147483647, %v2175_v19 }
 0x1a5   : > { %v2445_v35 = vmul.f32 %v2405_v57, %v560_v37  ;;  %v3163_v30 = vand.u32 2147483648, %v2175_v19  ;;  %v965_v37 = vsel %vm964_vm5, %v2235_v13, %v961_v50  ;;  %v975_v5 = vadd.f32 %v2242_v48, %v2306_v40 }
 0x1a6   : > { %v2450_v59 = vmul.f32 %v2415_v52, %v574_v44  ;;  %v956_v51 = vsel %vm953_vm3, %v955_v33, %v951_v36  ;;  %vm967_vm7 = vcmp.eq.f32.partialorder %v966_v23, 8.507059e+37  ;;  %v3164_v61 = vand.u32 2147483648, %v2178_v22 }
 0x1a7   : > { %v969_v32 = vor.u32 1.1754944e-38, %v3163_v30  ;;  %v989_v19 = vadd.f32 %v2251_v15, %v2312_v16  ;;  %v979_v40 = vsel %vm978_vm8, %v2242_v48, %v975_v5  ;;  %vm981_vm10 = vcmp.eq.f32.partialorder %v980_v34, 8.507059e+37 }
 0x1a8   : > { %v983_v44 = vor.u32 1.1754944e-38, %v3164_v61  ;;  %v994_v33 = vand.u32 2147483647, %v2181_v47  ;;  %v3165_v22 = vand.u32 2147483648, %v2181_v47  ;;  %v1003_v16 = vadd.f32 %v2259_v39, %v2320_v12 }
 0x1a9   : > { %v970_v13 = vsel %vm967_vm7, %v969_v32, %v965_v37  ;;  %v993_v36 = vsel %vm992_vm11, %v2251_v15, %v989_v19  ;;  %v1008_v48 = vand.u32 2147483647, %v2187_v21  ;;  %v3166_v30 = vand.u32 2147483648, %v2187_v21 }
 0x1aa   : > { %v984_v50 = vsel %vm981_vm10, %v983_v44, %v979_v40  ;;  %v997_v23 = vor.u32 1.1754944e-38, %v3165_v22  ;;  %vm995_vm12 = vcmp.eq.f32.partialorder %v994_v33, 8.507059e+37  ;;  %v2487_v47 = vmul.f32 %v2374_v45, %v2111_v17 }
 0x1ab   : > { %v1011_v32 = vor.u32 1.1754944e-38, %v3166_v30  ;;  %v2491_v15 = vmul.f32 %v2390_v10, %v2113_v55  ;;  %v2494_v12 = vmul.f32 %v942_v43, %v2115_v28  ;;  %v1007_v5 = vsel %vm1006_vm14, %v2259_v39, %v1003_v16 }
 0x1ac   : > { %v998_v37 = vsel %vm995_vm12, %v997_v23, %v993_v36  ;;  %vm1009_vm15 = vcmp.eq.f32.partialorder %v1008_v48, 8.507059e+37  ;;  %v2498_v34 = vmul.f32 %v956_v51, %v2117_v27  ;;  %v2501_v21 = vmul.f32 %v970_v13, %v2119_v25  ;;  %1021 = vst [vmem:[%s2511_s6 + $0x40] sm:$0xff] %v2487_v47 }
 0x1ad   : > { %v1012_v61 = vsel %vm1009_vm15, %v1011_v32, %v1007_v5  ;;  %v2504_v17 = vmul.f32 %v984_v50, %v2121_v56  ;;  %v2507_v45 = vmul.f32 %v998_v37, %v2123_v7  ;;  %v1029_v55 = vrot.slane %v2487_v47, 4  ;;  %1022 = vst [vmem:[%s2511_s6 + $0x48] sm:$0xff] %v2491_v15 }
 0x1ae   : > { %v2517_v28 = vmul.f32 %v1012_v61, %v2125_v8  ;;  %v1035_v27 = vrot.slane %v2491_v15, 4  ;;  %v1041_v25 = vrot.slane %v2494_v12, 4  ;;  %v1047_v56 = vrot.slane %v2498_v34, 4  ;;  %1023 = vst [vmem:[%s2511_s6 + $0x50] sm:$0xff] %v2494_v12 }
 0x1af   : > { %v1030_v7 = vmax.f32 %v2487_v47, %v1029_v55  ;;  %v1053_v39 = vrot.slane %v2501_v21, 4  ;;  %v1059_v10 = vrot.slane %v2504_v17, 4  ;;  %v1065_v8 = vrot.slane %v2507_v45, 4  ;;  %1024 = vst [vmem:[%s2511_s6 + $0x58] sm:$0xff] %v2498_v34 }
 0x1b0   : > { %v1036_v43 = vmax.f32 %v2491_v15, %v1035_v27  ;;  %v1042_v51 = vmax.f32 %v2494_v12, %v1041_v25  ;;  %v1048_v44 = vmax.f32 %v2498_v34, %v1047_v56  ;;  %v1071_v19 = vrot.slane %v2517_v28, 4  ;;  %1025 = vst [vmem:[%s2511_s6 + $0x60] sm:$0xff] %v2501_v21 }
 0x1b1   : > { %v1031_v13 = vrot.slane %v1030_v7, 2  ;;  %v1054_v40 = vmax.f32 %v2501_v21, %v1053_v39  ;;  %v1060_v33 = vmax.f32 %v2504_v17, %v1059_v10  ;;  %v1066_v50 = vmax.f32 %v2507_v45, %v1065_v8  ;;  %1026 = vst [vmem:[%s2511_s6 + $0x68] sm:$0xff] %v2504_v17 }
 0x1b2   : > { %v1037_v36 = vrot.slane %v1036_v43, 2  ;;  %v1043_v22 = vrot.slane %v1042_v51, 2  ;;  %v1049_v23 = vrot.slane %v1048_v44, 2  ;;  %v1072_v16 = vmax.f32 %v2517_v28, %v1071_v19  ;;  %1027 = vst [vmem:[%s2511_s6 + $0x70] sm:$0xff] %v2507_v45 }
 0x1b3   : > { %v1032_v48 = vmax.f32 %v1030_v7, %v1031_v13  ;;  %v1055_v30 = vrot.slane %v1054_v40, 2  ;;  %v1061_v32 = vrot.slane %v1060_v33, 2  ;;  %v1067_v37 = vrot.slane %v1066_v50, 2  ;;  %1028 = vst [vmem:[%s2511_s6 + $0x78] sm:$0xff] %v2517_v28 }
 0x1b4   : > { %v1038_v5 = vmax.f32 %v1036_v43, %v1037_v36  ;;  %v1044_v61 = vmax.f32 %v1042_v51, %v1043_v22  ;;  %v1050_v55 = vmax.f32 %v1048_v44, %v1049_v23  ;;  %v1073_v27 = vrot.slane %v1072_v16, 2 }
 0x1b5   : > { %v1033_v25 = vrot.slane %v1032_v48, 1  ;;  %v1056_v56 = vmax.f32 %v1054_v40, %v1055_v30  ;;  %v1062_v39 = vmax.f32 %v1060_v33, %v1061_v32  ;;  %v1068_v10 = vmax.f32 %v1066_v50, %v1067_v37 }
 0x1b6   : > { %v1039_v8 = vrot.slane %v1038_v5, 1  ;;  %v1045_v1 = vrot.slane %v1044_v61, 1  ;;  %v1051_v11 = vrot.slane %v1050_v55, 1  ;;  %v1074_v19 = vmax.f32 %v1072_v16, %v1073_v27 }
 0x1b7   : > { %v2548_v9 = vmax.f32 %v1032_v48, %v1033_v25  ;;  %v1057_v7 = vrot.slane %v1056_v56, 1  ;;  %v1063_v13 = vrot.slane %v1062_v39, 1  ;;  %v1069_v4 = vrot.slane %v1068_v10, 1 }
 0x1b8   : > { %v2550_v20 = vmax.f32 %v1038_v5, %v1039_v8  ;;  %v2552_v43 = vmax.f32 %v1044_v61, %v1045_v1  ;;  %v2554_v51 = vmax.f32 %v1050_v55, %v1051_v11  ;;  %v1075_v44 = vrot.slane %v1074_v19, 1 }
 0x1b9   : > { %v2556_v40 = vmax.f32 %v1056_v56, %v1057_v7  ;;  %v2558_v33 = vmax.f32 %v1062_v39, %v1063_v13  ;;  %v2560_v50 = vmax.f32 %v1068_v10, %v1069_v4  ;;  %vm1077_vm0 = vcmp.ge.f32.partialorder %v2487_v47, %v2548_v9 }
 0x1ba   : > { %v2564_v36 = vmax.f32 %v1074_v19, %v1075_v44  ;;  %vm1078_vm1 = vcmp.ge.f32.partialorder %v2491_v15, %v2550_v20  ;;  %vm1079_vm2 = vcmp.ge.f32.partialorder %v2494_v12, %v2552_v43  ;;  %vm1080_vm3 = vcmp.ge.f32.partialorder %v2498_v34, %v2554_v51 }
 0x1bb   : > { %vm1081_vm4 = vcmp.ge.f32.partialorder %v2501_v21, %v2556_v40  ;;  %vm1082_vm5 = vcmp.ge.f32.partialorder %v2504_v17, %v2558_v33  ;;  %vm1083_vm6 = vcmp.ge.f32.partialorder %v2507_v45, %v2560_v50  ;;  %v1088_v4 = vsel %vm1077_vm0, %v1087_v3, 2048 }
 0x1bc   : > { %vm1084_vm7 = vcmp.ge.f32.partialorder %v2517_v28, %v2564_v36  ;;  %v1089_v11 = vsel %vm1078_vm1, %v1087_v3, 2048  ;;  %v1090_v1 = vsel %vm1079_vm2, %v1087_v3, 2048  ;;  %v1091_v47 = vsel %vm1080_vm3, %v1087_v3, 2048 }
 0x1bd   : > { %v1092_v15 = vsel %vm1081_vm4, %v1087_v3, 2048  ;;  %v1093_v12 = vsel %vm1082_vm5, %v1087_v3, 2048  ;;  %v1094_v22 = vsel %vm1083_vm6, %v1087_v3, 2048  ;;  %v1095_v34 = vsel %vm1084_vm7, %v1087_v3, 2048 }
 0x1be   : > { %v1096_v23 = vrot.slane %v1088_v4, 4  ;;  %v1105_v16 = vrot.slane %v1089_v11, 4  ;;  %v1114_v21 = vrot.slane %v1090_v1, 4  ;;  %v1123_v48 = vrot.slane %v1091_v47, 4 }
 0x1bf   : > { %v1132_v30 = vrot.slane %v1092_v15, 4  ;;  %v1141_v17 = vrot.slane %v1093_v12, 4  ;;  %v1150_v32 = vrot.slane %v1094_v22, 4  ;;  %v1159_v37 = vrot.slane %v1095_v34, 4 }
 0x1c0   : > { %vm1097_vm8 = vcmp.lt.s32.totalorder %v1088_v4, %v1096_v23  ;;  %vm1106_vm9 = vcmp.lt.s32.totalorder %v1089_v11, %v1105_v16  ;;  %vm1115_vm10 = vcmp.lt.s32.totalorder %v1090_v1, %v1114_v21  ;;  %vm1124_vm11 = vcmp.lt.s32.totalorder %v1091_v47, %v1123_v48 }
 0x1c1   : > { %v1098_v45 = vsel %vm1097_vm8, %v1088_v4, %v1096_v23  ;;  %v1107_v28 = vsel %vm1106_vm9, %v1089_v11, %v1105_v16  ;;  %v1116_v5 = vsel %vm1115_vm10, %v1090_v1, %v1114_v21  ;;  %v1125_v61 = vsel %vm1124_vm11, %v1091_v47, %v1123_v48 }
 0x1c2   : > { %v1099_v55 = vrot.slane %v1098_v45, 2  ;;  %v1108_v27 = vrot.slane %v1107_v28, 2  ;;  %v1117_v25 = vrot.slane %v1116_v5, 2  ;;  %v1126_v3 = vrot.slane %v1125_v61, 2 }
 0x1c3   : > { %vm2580_vm12 = vcmp.lt.s32.totalorder %v1092_v15, %v1132_v30  ;;  %vm2584_vm13 = vcmp.lt.s32.totalorder %v1093_v12, %v1141_v17  ;;  %vm2588_vm14 = vcmp.lt.s32.totalorder %v1094_v22, %v1150_v32  ;;  %vm2592_vm15 = vcmp.lt.s32.totalorder %v1095_v34, %v1159_v37 }
 0x1c4   : > { %vm1100_vm0 = vcmp.lt.s32.totalorder %v1098_v45, %v1099_v55  ;;  %vm1109_vm1 = vcmp.lt.s32.totalorder %v1107_v28, %v1108_v27  ;;  %vm1118_vm2 = vcmp.lt.s32.totalorder %v1116_v5, %v1117_v25  ;;  %vm1127_vm3 = vcmp.lt.s32.totalorder %v1125_v61, %v1126_v3 }
 0x1c5   : > { %vm479_vm4 = vweird.f32 %v2284_v53  ;;  %v1101_v19 = vsel %vm1100_vm0, %v1098_v45, %v1099_v55  ;;  %v1110_v7 = vsel %vm1109_vm1, %v1107_v28, %v1108_v27  ;;  %v1119_v13 = vsel %vm1118_vm2, %v1116_v5, %v1117_v25 }
 0x1c6   : > { %v1128_v44 = vsel %vm1127_vm3, %v1125_v61, %v1126_v3  ;;  %v1102_v4 = vrot.slane %v1101_v19, 1  ;;  %v1111_v11 = vrot.slane %v1110_v7, 1  ;;  %v1120_v1 = vrot.slane %v1119_v13, 1 }
 0x1c7   : > { %v1129_v47 = vrot.slane %v1128_v44, 1  ;;  %v1134_v23 = vsel %vm2580_vm12, %v1092_v15, %v1132_v30  ;;  %v1143_v16 = vsel %vm2584_vm13, %v1093_v12, %v1141_v17  ;;  %v1152_v21 = vsel %vm2588_vm14, %v1094_v22, %v1150_v32 }
 0x1c8   : > { %v1161_v48 = vsel %vm2592_vm15, %v1095_v34, %v1159_v37  ;;  %vm493_vm5 = vweird.f32 %v2287_v62  ;;  %vm1103_vm6 = vcmp.lt.s32.totalorder %v1101_v19, %v1102_v4  ;;  %vm1112_vm7 = vcmp.lt.s32.totalorder %v1110_v7, %v1111_v11 }
 0x1c9   : > { %vm1121_vm8 = vcmp.lt.s32.totalorder %v1119_v13, %v1120_v1  ;;  %vm1130_vm9 = vcmp.lt.s32.totalorder %v1128_v44, %v1129_v47  ;;  %v2606_v45 = vsel %vm1103_vm6, %v1101_v19, %v1102_v4  ;;  %v2608_v28 = vsel %vm1112_vm7, %v1110_v7, %v1111_v11 }
 0x1ca   : > { %v2610_v15 = vsel %vm1121_vm8, %v1119_v13, %v1120_v1  ;;  %v2612_v30 = vsel %vm1130_vm9, %v1128_v44, %v1129_v47  ;;  %v1135_v12 = vrot.slane %v1134_v23, 2  ;;  %v1144_v17 = vrot.slane %v1143_v16, 2 }
 0x1cb   : > { %v1153_v22 = vrot.slane %v1152_v21, 2  ;;  %v1162_v32 = vrot.slane %v1161_v48, 2  ;;  %vm507_vm10 = vweird.f32 %v2289_v31  ;;  %v478_v34 = vadd.f32 %v2334_v49, %v2399_v38 }
 0x1cc   : > { %vm480_vm11 = vweird.f32 %v2334_v49  ;;  %v483_v37 = vand.u32 2147483647, %v2284_v53  ;;  %v3175_v5 = vand.u32 2147483648, %v2284_v53  ;;  %vm521_vm12 = vweird.f32 %v2295_v54 }
 0x1cd   : > { %vm1136_vm13 = vcmp.lt.s32.totalorder %v1134_v23, %v1135_v12  ;;  %vm1145_vm14 = vcmp.lt.s32.totalorder %v1143_v16, %v1144_v17  ;;  %vm1154_vm15 = vcmp.lt.s32.totalorder %v1152_v21, %v1153_v22  ;;  %vm1163_vm0 = vcmp.lt.s32.totalorder %v1161_v48, %v1162_v32  ;;  %vm2626_vm1 = vmor %vm479_vm4, %vm480_vm11 }
 0x1ce   : > { %v486_v61 = vor.u32 1.1754944e-38, %v3175_v5  ;;  %v1137_v55 = vsel %vm1136_vm13, %v1134_v23, %v1135_v12  ;;  %v1146_v27 = vsel %vm1145_vm14, %v1143_v16, %v1144_v17  ;;  %v1155_v25 = vsel %vm1154_vm15, %v1152_v21, %v1153_v22 }
 0x1cf   : > { %v1164_v3 = vsel %vm1163_vm0, %v1161_v48, %v1162_v32  ;;  %v1138_v56 = vrot.slane %v1137_v55, 1  ;;  %v1147_v39 = vrot.slane %v1146_v27, 1  ;;  %v1156_v38 = vrot.slane %v1155_v25, 1 }
 0x1d0   : > { %v1165_v10 = vrot.slane %v1164_v3, 1  ;;  %vm535_vm2 = vweird.f32 %v2308_v14  ;;  %v482_v19 = vsel %vm2626_vm1, %v2334_v49, %v478_v34  ;;  %vm484_vm3 = vcmp.eq.f32.partialorder %v483_v37, 8.507059e+37 }
 0x1d1   : > { %v492_v7 = vadd.f32 %v2340_v42, %v2409_v63  ;;  %vm494_vm6 = vweird.f32 %v2340_v42  ;;  %vm549_vm7 = vweird.f32 %v2314_v41  ;;  %vm1139_vm8 = vcmp.lt.s32.totalorder %v1137_v55, %v1138_v56 }
 0x1d2   : > { %vm1148_vm9 = vcmp.lt.s32.totalorder %v1146_v27, %v1147_v39  ;;  %vm1157_vm4 = vcmp.lt.s32.totalorder %v1155_v25, %v1156_v38  ;;  %vm1166_vm11 = vcmp.lt.s32.totalorder %v1164_v3, %v1165_v10  ;;  %vm563_vm13 = vweird.f32 %v2316_v6  ;;  %vm2649_vm14 = vmor %vm493_vm5, %vm494_vm6 }
 0x1d3   : > { %v2639_v53 = vsel %vm1139_vm8, %v1137_v55, %v1138_v56  ;;  %v2641_v13 = vsel %vm1148_vm9, %v1146_v27, %v1147_v39  ;;  %v2643_v44 = vsel %vm1157_vm4, %v1155_v25, %v1156_v38  ;;  %v2645_v49 = vsel %vm1166_vm11, %v1164_v3, %v1165_v10 }
 0x1d4   : > { %v487_v4 = vsel %vm484_vm3, %v486_v61, %v482_v19  ;;  %v496_v11 = vsel %vm2649_vm14, %v2340_v42, %v492_v7  ;;  %v497_v1 = vand.u32 2147483647, %v2287_v62  ;;  %v3180_v47 = vand.u32 2147483648, %v2287_v62  ;;  %v3188_v19 = vld [vmem:[#allocation14_spill] sm:$0xff] }
 0x1d5   : > { %v506_v16 = vadd.f32 %v2357_v24, %v2418_v0  ;;  %vm508_vm15 = vweird.f32 %v2357_v24  ;;  %v511_v21 = vand.u32 2147483647, %v2289_v31  ;;  %v3181_v48 = vand.u32 2147483648, %v2289_v31 }
 0x1d6   : > { %v500_v23 = vor.u32 1.1754944e-38, %v3180_v47  ;;  %vm577_vm5 = vweird.f32 %v2322_v46  ;;  %vm498_vm0 = vcmp.eq.f32.partialorder %v497_v1, 8.507059e+37  ;;  %vm509_vm1 = vmor %vm507_vm10, %vm508_vm15  ;;  %v520_v62 = vadd.f32 %v2366_v29, %v2425_v26  ;;  %v3191_v1 = vld [vmem:[#allocation17_spill] sm:$0xff] }
 0x1d7   : > { %v514_v12 = vor.u32 1.1754944e-38, %v3181_v48  ;;  %vm522_vm3 = vweird.f32 %v2366_v29  ;;  %v525_v42 = vand.u32 2147483647, %v2295_v54  ;;  %v510_v17 = vsel %vm509_vm1, %v2357_v24, %v506_v16  ;;  %v3192_v16 = vld [vmem:[#allocation18_spill] sm:$0xff]  ;;  %v3193_v48 = vld [vmem:[#allocation11_spill] sm:$0xff] }
 0x1d8   : > { %v501_v0 = vsel %vm498_vm0, %v500_v23, %v496_v11  ;;  %vm512_vm6 = vcmp.eq.f32.partialorder %v511_v21, 8.507059e+37  ;;  %vm523_vm8 = vmor %vm521_vm12, %vm522_vm3  ;;  %v3182_v22 = vand.u32 2147483648, %v2295_v54  ;;  %v534_v26 = vadd.f32 %v2383_v2, %v2431_v58  ;;  %v3190_v11 = vld [vmem:[#allocation16_spill] sm:$0xff] }
 0x1d9   : > { %v515_v34 = vsel %vm512_vm6, %v514_v12, %v510_v17  ;;  %v524_v31 = vsel %vm523_vm8, %v2366_v29, %v520_v62  ;;  %vm526_vm10 = vcmp.eq.f32.partialorder %v525_v42, 8.507059e+37  ;;  %vm536_vm9 = vweird.f32 %v2383_v2  ;;  %v3194_v62 = vld [vmem:[#allocation12_spill] sm:$0xff] }
 0x1da   : > { %v528_v32 = vor.u32 1.1754944e-38, %v3182_v22  ;;  %v539_v5 = vand.u32 2147483647, %v2308_v14  ;;  %v3183_v24 = vand.u32 2147483648, %v2308_v14  ;;  %vm537_vm12 = vmor %vm535_vm2, %vm536_vm9  ;;  %v548_v54 = vadd.f32 %v2395_v60, %v2436_v18 }
 0x1db   : > { %vm550_vm4 = vweird.f32 %v2395_v60  ;;  %v553_v29 = vand.u32 2147483647, %v2314_v41  ;;  %v3184_v58 = vand.u32 2147483648, %v2314_v41  ;;  %v538_v27 = vsel %vm537_vm12, %v2383_v2, %v534_v26 }
 0x1dc   : > { %v529_v37 = vsel %vm526_vm10, %v528_v32, %v524_v31  ;;  %v542_v61 = vor.u32 1.1754944e-38, %v3183_v24  ;;  %vm540_vm11 = vcmp.eq.f32.partialorder %v539_v5, 8.507059e+37  ;;  %vm551_vm14 = vmor %vm549_vm7, %vm550_vm4  ;;  %v562_v14 = vadd.f32 %v2405_v57, %v2445_v35 }
 0x1dd   : > { %v556_v55 = vor.u32 1.1754944e-38, %v3184_v58  ;;  %vm564_vm2 = vweird.f32 %v2405_v57  ;;  %v552_v18 = vsel %vm551_vm14, %v2395_v60, %v548_v54  ;;  %vm554_vm15 = vcmp.eq.f32.partialorder %v553_v29, 8.507059e+37 }
 0x1de   : > { %v543_v25 = vsel %vm540_vm11, %v542_v61, %v538_v27  ;;  %vm565_vm0 = vmor %vm563_vm13, %vm564_vm2  ;;  %v567_v3 = vand.u32 2147483647, %v2316_v6  ;;  %v3185_v41 = vand.u32 2147483648, %v2316_v6  ;;  %v576_v35 = vadd.f32 %v2415_v52, %v2450_v59  ;;  %v3189_v59 = vld [vmem:[#allocation15_spill] sm:$0xff] }
 0x1df   : > { %v557_v2 = vsel %vm554_vm15, %v556_v55, %v552_v18  ;;  %v566_v56 = vsel %vm565_vm0, %v2405_v57, %v562_v14  ;;  %vm578_vm1 = vweird.f32 %v2415_v52  ;;  %v581_v60 = vand.u32 2147483647, %v2322_v46  ;;  %v3187_v57 = vld [vmem:[#allocation13_spill] sm:$0xff] }
 0x1e0   : > { %v570_v39 = vor.u32 1.1754944e-38, %v3185_v41  ;;  %vm568_vm7 = vcmp.eq.f32.partialorder %v567_v3, 8.507059e+37  ;;  %v3186_v38 = vand.u32 2147483648, %v2322_v46  ;;  %vm579_vm13 = vmor %vm577_vm5, %vm578_vm1  ;;  %v2715_v6 = vmul.f32 %v487_v4, %v3187_v57 }
 0x1e1   : > { %v2718_v7 = vmul.f32 %v501_v0, %v3188_v19  ;;  %v2721_v63 = vmul.f32 %v515_v34, %v3189_v59  ;;  %v580_v46 = vsel %vm579_vm13, %v2415_v52, %v576_v35  ;;  %vm582_vm5 = vcmp.eq.f32.partialorder %v581_v60, 8.507059e+37 }
 0x1e2   : > { %v584_v10 = vor.u32 1.1754944e-38, %v3186_v38  ;;  %v571_v8 = vsel %vm568_vm7, %v570_v39, %v566_v56  ;;  %v2730_v4 = vmul.f32 %v529_v37, %v3190_v11  ;;  %v2733_v47 = vmul.f32 %v543_v25, %v3191_v1  ;;  %594 = vst [vmem:[%s2511_s6] sm:$0xff] %v2715_v6 }
 0x1e3   : > { %v2736_v21 = vmul.f32 %v557_v2, %v3192_v16  ;;  %v2739_v12 = vmul.f32 %v571_v8, %v3193_v48  ;;  %v602_v52 = vrot.slane %v2715_v6, 4  ;;  %595 = vst [vmem:[%s2511_s6 + $0x8] sm:$0xff] %v2718_v7  ;;  %v608_v0 = vrot.slane %v2718_v7, 4 }
 0x1e4   : > { %v585_v23 = vsel %vm582_vm5, %v584_v10, %v580_v46  ;;  %v614_v17 = vrot.slane %v2721_v63, 4  ;;  %v620_v22 = vrot.slane %v2730_v4, 4  ;;  %596 = vst [vmem:[%s2511_s6 + $0x10] sm:$0xff] %v2721_v63  ;;  %v626_v34 = vrot.slane %v2733_v47, 4 }
 0x1e5   : > { %v2745_v42 = vmul.f32 %v585_v23, %v3194_v62  ;;  %v603_v32 = vmax.f32 %v2715_v6, %v602_v52  ;;  %v632_v31 = vrot.slane %v2736_v21, 4  ;;  %v638_v26 = vrot.slane %v2739_v12, 4  ;;  %597 = vst [vmem:[%s2511_s6 + $0x18] sm:$0xff] %v2730_v4 }
 0x1e6   : > { %v609_v37 = vmax.f32 %v2718_v7, %v608_v0  ;;  %v615_v5 = vmax.f32 %v2721_v63, %v614_v17  ;;  %v621_v24 = vmax.f32 %v2730_v4, %v620_v22  ;;  %598 = vst [vmem:[%s2511_s6 + $0x20] sm:$0xff] %v2733_v47  ;;  %v627_v29 = vmax.f32 %v2733_v47, %v626_v34 }
 0x1e7   : > { %v644_v61 = vrot.slane %v2745_v42, 4  ;;  %v604_v54 = vrot.slane %v603_v32, 2  ;;  %v633_v58 = vmax.f32 %v2736_v21, %v632_v31  ;;  %v639_v55 = vmax.f32 %v2739_v12, %v638_v26  ;;  %599 = vst [vmem:[%s2511_s6 + $0x28] sm:$0xff] %v2736_v21 }
 0x1e8   : > { %v610_v27 = vrot.slane %v609_v37, 2  ;;  %v616_v14 = vrot.slane %v615_v5, 2  ;;  %v622_v25 = vrot.slane %v621_v24, 2  ;;  %600 = vst [vmem:[%s2511_s6 + $0x30] sm:$0xff] %v2739_v12  ;;  %v628_v2 = vrot.slane %v627_v29, 2 }
 0x1e9   : > { %v645_v18 = vmax.f32 %v2745_v42, %v644_v61  ;;  %v605_v3 = vmax.f32 %v603_v32, %v604_v54  ;;  %v634_v56 = vrot.slane %v633_v58, 2  ;;  %v640_v41 = vrot.slane %v639_v55, 2  ;;  %601 = vst [vmem:[%s2511_s6 + $0x38] sm:$0xff] %v2745_v42 }
 0x1ea   : > { %v611_v39 = vmax.f32 %v609_v37, %v610_v27  ;;  %v617_v35 = vmax.f32 %v615_v5, %v616_v14  ;;  %v623_v60 = vmax.f32 %v621_v24, %v622_v25  ;;  %v629_v8 = vmax.f32 %v627_v29, %v628_v2 }
 0x1eb   : > { %v646_v38 = vrot.slane %v645_v18, 2  ;;  %v606_v10 = vrot.slane %v605_v3, 1  ;;  %v635_v57 = vmax.f32 %v633_v58, %v634_v56  ;;  %v641_v19 = vmax.f32 %v639_v55, %v640_v41 }
 0x1ec   : > { %1701 = shalt.err (!%p1698_p0)
}
 0x1ed   : > { %s1797_s6 = smov 1024   ;;  %s1798_s7 = smov 64   ;;  %v612_v59 = vrot.slane %v611_v39, 1  ;;  %v618_v46 = vrot.slane %v617_v35, 1  ;;  %v624_v11 = vrot.slane %v623_v60, 1  ;;  %v647_v1 = vmax.f32 %v645_v18, %v646_v38  ;;  %v660_v62 = vpop.permute.xlu1 %659 }
 0x1ee   : > { %1525 = dma.vmem_to_hbm [thread:$0]  (%p1870_p9), %s2771_s19, 2048, %s2773_s21, %s1321_s22, %s1797_s6, %s1797_s6, %s1798_s7   ;;  %v2796_v23 = vmax.f32 %v605_v3, %v606_v10  ;;  %v630_v16 = vrot.slane %v629_v8, 1  ;;  %v636_v48 = vrot.slane %v635_v57, 1  ;;  %v642_v52 = vrot.slane %v641_v19, 1 }
 0x1ef   : > { %v2798_v0 = vmax.f32 %v611_v39, %v612_v59  ;;  %v2800_v17 = vmax.f32 %v617_v35, %v618_v46  ;;  %v2802_v22 = vmax.f32 %v623_v60, %v624_v11  ;;  %v648_v32 = vrot.slane %v647_v1, 1  ;;  %s1522_s8 = sshll.u32 %s1780_s15, 5  ;;  %s234_s19 = scalar_lea.vmem [#allocation6], %s1503_s18 }
 0x1f0   : > { %v2804_v34 = vmax.f32 %v629_v8, %v630_v16  ;;  %v2806_v31 = vmax.f32 %v635_v57, %v636_v48  ;;  %v2808_v26 = vmax.f32 %v641_v19, %v642_v52  ;;  %vm650_vm3 = vcmp.ge.f32.partialorder %v2715_v6, %v2796_v23  ;;  %s1358_s10 = scalar_lea.hbm %s3111_s3, %s1522_s8  ;;  %s1360_s21 = sshll.u32 %s234_s19, 4  ;;  %s1361_s21 = int_to_ptr.vmem [resolvable:$true] %s1360_s21 }
 0x1f1   : > { %v2812_v37 = vmax.f32 %v647_v1, %v648_v32  ;;  %vm651_vm6 = vcmp.ge.f32.partialorder %v2718_v7, %v2798_v0  ;;  %vm652_vm8 = vcmp.ge.f32.partialorder %v2721_v63, %v2800_v17  ;;  %vm653_vm10 = vcmp.ge.f32.partialorder %v2730_v4, %v2802_v22  ;;  %s1362_s22 = sshll.u32 %s1358_s10, 4  ;;  %s1326_s23 = scalar_lea.sflag [#allocation7], %s1893_s11  ;;  %s1363_s22 = int_to_ptr.hbm [resolvable:$true] %s1362_s22 }
 0x1f2   : > { %vm654_vm9 = vcmp.ge.f32.partialorder %v2733_v47, %v2804_v34  ;;  %vm655_vm12 = vcmp.ge.f32.partialorder %v2736_v21, %v2806_v31  ;;  %vm656_vm4 = vcmp.ge.f32.partialorder %v2739_v12, %v2808_v26  ;;  %v661_v6 = vsel %vm650_vm3, %v660_v62, 2048  ;;  %s1716_s28 = sshra.s32 %s1363_s22, 4  ;;  %s1722_s4 = scalar_lea.hbm %s3111_s3, 64  ;;  %s1717_s28 = int_to_ptr.hbm [resolvable:$true] %s1716_s28 }
 0x1f3   : > { %vm657_vm11 = vcmp.ge.f32.partialorder %v2745_v42, %v2812_v37  ;;  %v662_v7 = vsel %vm651_vm6, %v660_v62, 2048  ;;  %v663_v5 = vsel %vm652_vm8, %v660_v62, 2048  ;;  %v664_v24 = vsel %vm653_vm10, %v660_v62, 2048  ;;  %s1718_s29 = scalar_lea.hbm %s1717_s28, 32  ;;  %p1723_p4 = scmp.lt.s32.totalorder %s1717_s28, %s3111_s3 }
 0x1f4   : > { %v665_v63 = vsel %vm654_vm9, %v660_v62, 2048  ;;  %v666_v61 = vsel %vm655_vm12, %v660_v62, 2048  ;;  %v667_v54 = vsel %vm656_vm4, %v660_v62, 2048  ;;  %v668_v4 = vsel %vm657_vm11, %v660_v62, 2048  ;;  %p1719_p1 = scmp.ne.s32.totalorder %s1717_s28, %s1718_s29  ;;  %p1724_p5 = scmp.lt.s32.totalorder %s1722_s4, %s1718_s29 }
 0x1f5   : > { %v669_v29 = vrot.slane %v661_v6, 4  ;;  %v678_v58 = vrot.slane %v662_v7, 4  ;;  %v687_v47 = vrot.slane %v663_v5, 4  ;;  %v696_v55 = vrot.slane %v664_v24, 4 }
 0x1f6   : > { %v705_v27 = vrot.slane %v665_v63, 4  ;;  %v714_v21 = vrot.slane %v666_v61, 4  ;;  %v723_v14 = vrot.slane %v667_v54, 4  ;;  %v732_v25 = vrot.slane %v668_v4, 4  ;;  %p1720_p2 = pnand %p1719_p1, %p1870_p9  ;;  %p1725_p6 = por %p1724_p5, %p1723_p4 }
 0x1f7   : > { %vm670_vm14 = vcmp.lt.s32.totalorder %v661_v6, %v669_v29  ;;  %vm679_vm2 = vcmp.lt.s32.totalorder %v662_v7, %v678_v58  ;;  %vm688_vm15 = vcmp.lt.s32.totalorder %v663_v5, %v687_v47  ;;  %vm697_vm0 = vcmp.lt.s32.totalorder %v664_v24, %v696_v55 }
 0x1f8   : > { %v671_v12 = vsel %vm670_vm14, %v661_v6, %v669_v29  ;;  %v680_v42 = vsel %vm679_vm2, %v662_v7, %v678_v58  ;;  %v689_v18 = vsel %vm688_vm15, %v663_v5, %v687_v47  ;;  %v698_v3 = vsel %vm697_vm0, %v664_v24, %v696_v55  ;;  %p1721_p3 = pneg %p1720_p2 }
 0x1f9   : > { %v672_v2 = vrot.slane %v671_v12, 2  ;;  %v681_v56 = vrot.slane %v680_v42, 2  ;;  %v690_v41 = vrot.slane %v689_v18, 2  ;;  %v699_v39 = vrot.slane %v698_v3, 2 }
 0x1fa   : > { %vm2828_vm7 = vcmp.lt.s32.totalorder %v665_v63, %v705_v27  ;;  %vm2832_vm1 = vcmp.lt.s32.totalorder %v666_v61, %v714_v21  ;;  %vm2836_vm13 = vcmp.lt.s32.totalorder %v667_v54, %v723_v14  ;;  %vm2840_vm5 = vcmp.lt.s32.totalorder %v668_v4, %v732_v25  ;;  %p1726_p7 = pnand %p1725_p6, %p1721_p3 }
 0x1fb   : > { %vm673_vm3 = vcmp.lt.s32.totalorder %v671_v12, %v672_v2  ;;  %vm682_vm6 = vcmp.lt.s32.totalorder %v680_v42, %v681_v56  ;;  %vm691_vm8 = vcmp.lt.s32.totalorder %v689_v18, %v690_v41  ;;  %vm700_vm10 = vcmp.lt.s32.totalorder %v698_v3, %v699_v39 }
 0x1fc   : > { %v674_v8 = vsel %vm673_vm3, %v671_v12, %v672_v2  ;;  %v683_v57 = vsel %vm682_vm6, %v680_v42, %v681_v56  ;;  %v692_v19 = vsel %vm691_vm8, %v689_v18, %v690_v41  ;;  %v701_v59 = vsel %vm700_vm10, %v698_v3, %v699_v39 }
 0x1fd   : > { %v675_v46 = vrot.slane %v674_v8, 1  ;;  %v684_v11 = vrot.slane %v683_v57, 1  ;;  %v693_v1 = vrot.slane %v692_v19, 1  ;;  %v702_v16 = vrot.slane %v701_v59, 1 }
 0x1fe   : > { %v707_v48 = vsel %vm2828_vm7, %v665_v63, %v705_v27  ;;  %v716_v52 = vsel %vm2832_vm1, %v666_v61, %v714_v21  ;;  %v725_v62 = vsel %vm2836_vm13, %v667_v54, %v723_v14  ;;  %v734_v32 = vsel %vm2840_vm5, %v668_v4, %v732_v25 }
 0x1ff   : > { %vm676_vm9 = vcmp.lt.s32.totalorder %v674_v8, %v675_v46  ;;  %vm685_vm12 = vcmp.lt.s32.totalorder %v683_v57, %v684_v11  ;;  %vm694_vm4 = vcmp.lt.s32.totalorder %v692_v19, %v693_v1  ;;  %vm703_vm11 = vcmp.lt.s32.totalorder %v701_v59, %v702_v16 }
 0x200   : > { %v677_v6 = vsel %vm676_vm9, %v674_v8, %v675_v46  ;;  %v686_v7 = vsel %vm685_vm12, %v683_v57, %v684_v11  ;;  %v695_v5 = vsel %vm694_vm4, %v692_v19, %v693_v1  ;;  %v704_v24 = vsel %vm703_vm11, %v701_v59, %v702_v16 }
 0x201   : > { %v708_v29 = vrot.slane %v707_v48, 2  ;;  %v717_v58 = vrot.slane %v716_v52, 2  ;;  %v726_v63 = vrot.slane %v725_v62, 2  ;;  %v735_v47 = vrot.slane %v734_v32, 2 }
 0x202   : > { %vm741_vm14 = vcmp.gt.f32.partialorder %v2796_v23, -1.0  ;;  %vm742_vm2 = vcmp.gt.f32.partialorder %v2798_v0, -1.0  ;;  %vm743_vm15 = vcmp.gt.f32.partialorder %v2800_v17, -1.0  ;;  %vm744_vm0 = vcmp.gt.f32.partialorder %v2802_v22, -1.0 }
 0x203   : > { %vm709_vm7 = vcmp.lt.s32.totalorder %v707_v48, %v708_v29  ;;  %vm718_vm1 = vcmp.lt.s32.totalorder %v716_v52, %v717_v58  ;;  %vm727_vm13 = vcmp.lt.s32.totalorder %v725_v62, %v726_v63  ;;  %vm736_vm5 = vcmp.lt.s32.totalorder %v734_v32, %v735_v47 }
 0x204   : > { %v710_v61 = vsel %vm709_vm7, %v707_v48, %v708_v29  ;;  %v719_v54 = vsel %vm718_vm1, %v716_v52, %v717_v58  ;;  %v728_v4 = vsel %vm727_vm13, %v725_v62, %v726_v63  ;;  %v737_v55 = vsel %vm736_vm5, %v734_v32, %v735_v47 }
 0x205   : > { %v711_v27 = vrot.slane %v710_v61, 1  ;;  %v720_v21 = vrot.slane %v719_v54, 1  ;;  %v729_v14 = vrot.slane %v728_v4, 1  ;;  %v738_v25 = vrot.slane %v737_v55, 1 }
 0x206   : > { %vm745_vm3 = vcmp.gt.f32.partialorder %v2804_v34, -1.0  ;;  %vm746_vm6 = vcmp.gt.f32.partialorder %v2806_v31, -1.0  ;;  %vm747_vm8 = vcmp.gt.f32.partialorder %v2808_v26, -1.0  ;;  %vm748_vm10 = vcmp.gt.f32.partialorder %v2812_v37, -1.0 }
 0x207   : > { %vm712_vm9 = vcmp.lt.s32.totalorder %v710_v61, %v711_v27  ;;  %vm721_vm12 = vcmp.lt.s32.totalorder %v719_v54, %v720_v21  ;;  %vm730_vm4 = vcmp.lt.s32.totalorder %v728_v4, %v729_v14  ;;  %vm739_vm11 = vcmp.lt.s32.totalorder %v737_v55, %v738_v25 }
 0x208   : > { %v713_v12 = vsel %vm712_vm9, %v710_v61, %v711_v27  ;;  %v722_v42 = vsel %vm721_vm12, %v719_v54, %v720_v21  ;;  %v731_v18 = vsel %vm730_vm4, %v728_v4, %v729_v14  ;;  %v740_v3 = vsel %vm739_vm11, %v737_v55, %v738_v25 }
 0x209   : > { %v749_v2 = vsel %vm741_vm14, %v2796_v23, -1.0  ;;  %v750_v56 = vsel %vm742_vm2, %v2798_v0, -1.0  ;;  %v751_v41 = vsel %vm743_vm15, %v2800_v17, -1.0  ;;  %v752_v39 = vsel %vm744_vm0, %v2802_v22, -1.0 }
 0x20a   : > { %v753_v35 = vsel %vm745_vm3, %v2804_v34, -1.0  ;;  %v754_v60 = vsel %vm746_vm6, %v2806_v31, -1.0  ;;  %v755_v38 = vsel %vm747_vm8, %v2808_v26, -1.0  ;;  %v756_v10 = vsel %vm748_vm10, %v2812_v37, -1.0 }
 0x20b   : > { %v757_v8 = vsel %vm741_vm14, %v677_v6, 2048  ;;  %v758_v57 = vsel %vm742_vm2, %v686_v7, 2048  ;;  %v759_v19 = vsel %vm743_vm15, %v695_v5, 2048  ;;  %v760_v59 = vsel %vm744_vm0, %v704_v24, 2048 }
 0x20c   : > { %v761_v46 = vsel %vm745_vm3, %v713_v12, 2048  ;;  %v762_v11 = vsel %vm746_vm6, %v722_v42, 2048  ;;  %v763_v1 = vsel %vm747_vm8, %v731_v18, 2048  ;;  %v764_v23 = vsel %vm748_vm10, %v740_v3, 2048 }
 0x20d   : > { %vm1168_vm14 = vcmp.gt.f32.partialorder %v2548_v9, %v749_v2  ;;  %vm1169_vm2 = vcmp.gt.f32.partialorder %v2550_v20, %v750_v56  ;;  %vm1170_vm15 = vcmp.gt.f32.partialorder %v2552_v43, %v751_v41  ;;  %vm1171_vm0 = vcmp.gt.f32.partialorder %v2554_v51, %v752_v39 }
 0x20e   : > { %vm1172_vm7 = vcmp.gt.f32.partialorder %v2556_v40, %v753_v35  ;;  %vm1173_vm1 = vcmp.gt.f32.partialorder %v2558_v33, %v754_v60  ;;  %vm1174_vm13 = vcmp.gt.f32.partialorder %v2560_v50, %v755_v38  ;;  %vm1175_vm5 = vcmp.gt.f32.partialorder %v2564_v36, %v756_v10 }
 0x20f   : > { %v2909_v0 = vsel %vm1169_vm2, %v2550_v20, %v750_v56  ;;  %v2912_v17 = vsel %vm1171_vm0, %v2554_v51, %v752_v39  ;;  %v2915_v22 = vsel %vm1173_vm1, %v2558_v33, %v754_v60  ;;  %v2918_v34 = vsel %vm1175_vm5, %v2564_v36, %v756_v10 }
 0x210   : > { %v2923_v31 = vsel %vm1168_vm14, %v2606_v45, %v757_v8  ;;  %v2926_v26 = vsel %vm1169_vm2, %v2608_v28, %v758_v57  ;;  %v2931_v20 = vsel %vm1170_vm15, %v2610_v15, %v759_v19  ;;  %v2934_v51 = vsel %vm1171_vm0, %v2612_v30, %v760_v59 }
 0x211   : > { %v2939_v33 = vsel %vm1172_vm7, %v2639_v53, %v761_v46  ;;  %v2942_v36 = vsel %vm1173_vm1, %v2641_v13, %v762_v11  ;;  %v2947_v45 = vsel %vm1174_vm13, %v2643_v44, %v763_v1  ;;  %v2950_v28 = vsel %vm1175_vm5, %v2645_v49, %v764_v23 }
 0x212   : > { %v1192_v15 = vshra.s32 %v2923_v31, 7  ;;  %v1193_v30 = vshra.s32 %v2926_v26, 7  ;;  %v1194_v37 = vshra.s32 %v2931_v20, 7  ;;  %v1195_v53 = vshra.s32 %v2934_v51, 7 }
 0x213   : > { %v1196_v16 = vshra.s32 %v2939_v33, 7  ;;  %v1197_v13 = vshra.s32 %v2942_v36, 7  ;;  %v1198_v48 = vshra.s32 %v2947_v45, 7  ;;  %v1199_v44 = vshra.s32 %v2950_v28, 7 }
 0x214   : > { %v1201_v52 = vand.u32 127, %v2926_v26  ;;  %v1203_v49 = vand.u32 127, %v2934_v51  ;;  %v1205_v62 = vand.u32 127, %v2942_v36  ;;  %v1207_v32 = vand.u32 127, %v2950_v28 }
 0x215   : > { %v2967_v6 = vsel %vm1168_vm14, %v2548_v9, %v749_v2  ;;  %v2972_v7 = vsel %vm1170_vm15, %v2552_v43, %v751_v41  ;;  %v2977_v5 = vsel %vm1172_vm7, %v2556_v40, %v753_v35  ;;  %v2982_v24 = vsel %vm1174_vm13, %v2560_v50, %v755_v38 }
 0x216   : > { %v1200_v29 = vand.u32 127, %v2923_v31  ;;  %v1202_v9 = vand.u32 127, %v2931_v20  ;;  %v1204_v58 = vand.u32 127, %v2939_v33  ;;  %v1206_v63 = vand.u32 127, %v2947_v45 }
 0x217   : > { %vm1208_vm3 = vcmp.lt.f32.partialorder %v2967_v6, 0.3  ;;  %vm1209_vm6 = vcmp.lt.f32.partialorder %v2909_v0, 0.3  ;;  %vm1210_vm8 = vcmp.lt.f32.partialorder %v2972_v7, 0.3 }
 0x218   : > { %vm1211_vm10 = vcmp.lt.f32.partialorder %v2912_v17, 0.3  ;;  %vm1212_vm9 = vcmp.lt.f32.partialorder %v2977_v5, 0.3  ;;  %vm1213_vm12 = vcmp.lt.f32.partialorder %v2915_v22, 0.3 }
 0x219   : > { %vm1214_vm4 = vcmp.lt.f32.partialorder %v2982_v24, 0.3  ;;  %vm1215_vm11 = vcmp.lt.f32.partialorder %v2918_v34, 0.3  ;;  %vm1216_vm14 = vcmp.lt.f32.partialorder %v2967_v6, 0.7 }
 0x21a   : > { %vm1217_vm2 = vcmp.lt.f32.partialorder %v2909_v0, 0.7  ;;  %vm1218_vm15 = vcmp.lt.f32.partialorder %v2972_v7, 0.7  ;;  %vm1219_vm0 = vcmp.lt.f32.partialorder %v2912_v17, 0.7 }
 0x21b   : > { %vm1220_vm7 = vcmp.lt.f32.partialorder %v2977_v5, 0.7  ;;  %vm1221_vm1 = vcmp.lt.f32.partialorder %v2915_v22, 0.7  ;;  %vm1222_vm13 = vcmp.lt.f32.partialorder %v2982_v24, 0.7 }
 0x21c   : > { %vm1223_vm5 = vcmp.lt.f32.partialorder %v2918_v34, 0.7  ;;  %v3203_v43 = vmov 1  }
 0x21d   : > { %v1224_v40 = vsel %vm1216_vm14, 4294967295, %v3203_v43  ;;  %v1225_v50 = vsel %vm1217_vm2, 4294967295, %v3203_v43  ;;  %v1226_v47 = vsel %vm1218_vm15, 4294967295, %v3203_v43  ;;  %v1227_v61 = vsel %vm1219_vm0, 4294967295, %v3203_v43 }
 0x21e   : > { %v1228_v54 = vsel %vm1220_vm7, 4294967295, %v3203_v43  ;;  %v1229_v4 = vsel %vm1221_vm1, 4294967295, %v3203_v43  ;;  %v1230_v55 = vsel %vm1222_vm13, 4294967295, %v3203_v43  ;;  %v1231_v27 = vsel %vm1223_vm5, 4294967295, %v3203_v43 }
 0x21f   : > { %v1232_v21 = vsel %vm1208_vm3, 0, %v1224_v40  ;;  %v1233_v14 = vsel %vm1209_vm6, 0, %v1225_v50  ;;  %v1234_v25 = vsel %vm1210_vm8, 0, %v1226_v47  ;;  %v1235_v12 = vsel %vm1211_vm10, 0, %v1227_v61 }
 0x220   : > { %v1236_v42 = vsel %vm1212_vm9, 0, %v1228_v54  ;;  %v1237_v18 = vsel %vm1213_vm12, 0, %v1229_v4  ;;  %v1238_v3 = vsel %vm1214_vm4, 0, %v1230_v55  ;;  %v1239_v2 = vsel %vm1215_vm11, 0, %v1231_v27 }
 0x221   : > { %vm1240_vm3 = vcmp.eq.s32.totalorder %v1232_v21, 0  ;;  %vm1241_vm6 = vcmp.eq.s32.totalorder %v1233_v14, 0  ;;  %vm1242_vm14 = vcmp.eq.s32.totalorder %v1234_v25, 0  ;;  %vm1243_vm2 = vcmp.eq.s32.totalorder %v1235_v12, 0 }
 0x222   : > { %vm1244_vm8 = vcmp.eq.s32.totalorder %v1236_v42, 0  ;;  %vm1245_vm15 = vcmp.eq.s32.totalorder %v1237_v18, 0  ;;  %vm1246_vm0 = vcmp.eq.s32.totalorder %v1238_v3, 0  ;;  %vm1247_vm10 = vcmp.eq.s32.totalorder %v1239_v2, 0 }
 0x223   : > { %v1248_v56 = vsel %vm1240_vm3, 80, %v1200_v29  ;;  %v1249_v41 = vsel %vm1241_vm6, 80, %v1201_v52  ;;  %v1250_v39 = vsel %vm1242_vm14, 80, %v1202_v9  ;;  %v1251_v35 = vsel %vm1243_vm2, 80, %v1203_v49 }
 0x224   : > { %v1252_v60 = vsel %vm1244_vm8, 80, %v1204_v58  ;;  %v1253_v38 = vsel %vm1245_vm15, 80, %v1205_v62  ;;  %v1254_v10 = vsel %vm1246_vm0, 80, %v1206_v63  ;;  %v1255_v8 = vsel %vm1247_vm10, 80, %v1207_v32 }
 0x225   : > { %vm1256_vm9 = vcmp.eq.s32.totalorder %v1232_v21, 4294967295  ;;  %vm1257_vm12 = vcmp.eq.s32.totalorder %v1233_v14, 4294967295  ;;  %vm1258_vm4 = vcmp.eq.s32.totalorder %v1234_v25, 4294967295  ;;  %vm1259_vm11 = vcmp.eq.s32.totalorder %v1235_v12, 4294967295 }
 0x226   : > { %vm1260_vm7 = vcmp.eq.s32.totalorder %v1236_v42, 4294967295  ;;  %vm1261_vm1 = vcmp.eq.s32.totalorder %v1237_v18, 4294967295  ;;  %vm1262_vm13 = vcmp.eq.s32.totalorder %v1238_v3, 4294967295  ;;  %vm1263_vm5 = vcmp.eq.s32.totalorder %v1239_v2, 4294967295 }
 0x227   : > { %v1264_v57 = vsel %vm1256_vm9, 4294967295, %v1248_v56  ;;  %v1265_v19 = vsel %vm1257_vm12, 4294967295, %v1249_v41  ;;  %v1266_v59 = vsel %vm1258_vm4, 4294967295, %v1250_v39  ;;  %v1267_v46 = vsel %vm1259_vm11, 4294967295, %v1251_v35 }
 0x228   : > { %v1268_v11 = vsel %vm1260_vm7, 4294967295, %v1252_v60  ;;  %v1269_v1 = vsel %vm1261_vm1, 4294967295, %v1253_v38  ;;  %v1270_v23 = vsel %vm1262_vm13, 4294967295, %v1254_v10  ;;  %v1271_v52 = vsel %vm1263_vm5, 4294967295, %v1255_v8 }
 0x229   : > { %vm1280_vm3 = vcmask 1040384   ;;  %vm1289_vm6 = vcmask 1041408   ;;  %vm1298_vm14 = vcmask 1042432   ;;  %vm1311_vm2 = vcmask 1043456  }
 0x22a   : > { %v1281_v49 = vsel %vm1280_vm3, %v2967_v6, %v1192_v15  ;;  %v1282_v62 = vsel %vm1280_vm3, %v2909_v0, %v1193_v30  ;;  %v1283_v32 = vsel %vm1280_vm3, %v2972_v7, %v1194_v37  ;;  %v1284_v29 = vsel %vm1280_vm3, %v2912_v17, %v1195_v53 }
 0x22b   : > { %v1285_v9 = vsel %vm1280_vm3, %v2977_v5, %v1196_v16  ;;  %v1286_v31 = vsel %vm1280_vm3, %v2915_v22, %v1197_v13  ;;  %v1287_v0 = vsel %vm1280_vm3, %v2982_v24, %v1198_v48  ;;  %v1288_v26 = vsel %vm1280_vm3, %v2918_v34, %v1199_v44 }
 0x22c   : > { %v1290_v20 = vsel %vm1289_vm6, %v1281_v49, %v1232_v21  ;;  %v1291_v17 = vsel %vm1289_vm6, %v1282_v62, %v1233_v14  ;;  %v1292_v51 = vsel %vm1289_vm6, %v1283_v32, %v1234_v25  ;;  %v1293_v33 = vsel %vm1289_vm6, %v1284_v29, %v1235_v12 }
 0x22d   : > { %v1294_v36 = vsel %vm1289_vm6, %v1285_v9, %v1236_v42  ;;  %v1295_v22 = vsel %vm1289_vm6, %v1286_v31, %v1237_v18  ;;  %v1296_v45 = vsel %vm1289_vm6, %v1287_v0, %v1238_v3  ;;  %v1297_v28 = vsel %vm1289_vm6, %v1288_v26, %v1239_v2 }
 0x22e   : > { %v1299_v34 = vsel %vm1298_vm14, %v1290_v20, %v1264_v57  ;;  %v1300_v15 = vsel %vm1298_vm14, %v1291_v17, %v1265_v19  ;;  %v1301_v30 = vsel %vm1298_vm14, %v1292_v51, %v1266_v59  ;;  %v1302_v37 = vsel %vm1298_vm14, %v1293_v33, %v1267_v46 }
 0x22f   : > { %v1303_v53 = vsel %vm1298_vm14, %v1294_v36, %v1268_v11  ;;  %v1304_v16 = vsel %vm1298_vm14, %v1295_v22, %v1269_v1  ;;  %v1305_v13 = vsel %vm1298_vm14, %v1296_v45, %v1270_v23  ;;  %v1306_v48 = vsel %vm1298_vm14, %v1297_v28, %v1271_v52 }
 0x230   : > { %v1307_v44 = vrot.slane %v1300_v15, 4  ;;  %v1308_v6 = vrot.slane %v1302_v37, 4  ;;  %v1309_v7 = vrot.slane %v1304_v16, 4  ;;  %v1310_v5 = vrot.slane %v1306_v48, 4 }
 0x232   : > { %v1312_v24 = vsel %vm1311_vm2, %v1299_v34, %v1307_v44  ;;  %v1313_v58 = vsel %vm1311_vm2, %v1301_v30, %v1308_v6  ;;  %v1314_v63 = vsel %vm1311_vm2, %v1303_v53, %v1309_v7  ;;  %v1315_v43 = vsel %vm1311_vm2, %v1305_v13, %v1310_v5 }
 0x233   : > { %1316 = vst [vmem:[%s234_s19] sm:$0xff] %v1312_v24 }
 0x234   : > { %1317 = vst [vmem:[%s234_s19 + $0x8] sm:$0xff] %v1313_v58 }
 0x235   : > { %1318 = vst [vmem:[%s234_s19 + $0x10] sm:$0xff] %v1314_v63 }
 0x236   : > { %1319 = vst [vmem:[%s234_s19 + $0x18] sm:$0xff] %v1315_v43 }
 0x237   : > { %1729 = shalt.err (!%p1726_p7)
}
 0x238   : > { %1526 = dma.vmem_to_hbm [thread:$0]  (%p1870_p9), %s1361_s21, 512, %s1363_s22, %s1326_s23  }
 0x239 PF: > { %s1374_s11 = sand.u32 1, %s1768_s12   ;;  %p1534_p8 = pnand %p1498_p12, %p1877_p11 }
 0x23a   : > { %s1375_s6 = scalar_lea.sflag [#allocation4], %s1374_s11 }
 0x23b   : > { %p1535_p10 = pneg %p1534_p8 }
 0x23d   : > { %1759 = dma.done.wait (%p1535_p10), %s1375_s6, 2048  }
 0x23e   : > { %1761 = vsyncadd (%p1535_p10), %s1375_s6, 4294965248  ;;  %s1385_s7 = scalar_lea.sflag [#allocation7], %s1374_s11 }
 0x23f   : > { %1763 = dma.done.wait (%p1535_p10), %s1385_s7, 512  }
 0x240   : > { %1765 = vsyncadd (%p1535_p10), %s1385_s7, 4294966784  ;;  %s23_s17 = sadd.s32 1, %s1788_s17   ;;  %s3204_s12 = smov %s1772_s13 }
 0x241   : > { %p20_p13 = scmp.ge.s32.totalorder %s23_s17, 4   ;;  %s3205_s13 = smov %s1776_s14 }
 0x242   : > { %s3206_s14 = smov %s1875_s26  ;;  %s3207_s15 = smov %s1784_s16 }
 0x243   : > { %s3208_s16 = smov %s3210_s20  ;;  %22 = sbr.rel (!%p20_p13) target bundleno = 8 (0x8), region = 96 }
 0x248   :  { %1391 = vsyncpa [#allocation3], 1 }
 0x249   :  { %1393 = vsyncpa [#allocation3 + $0x1], 1 }
 0x24a   :  { %1394 = vsyncpa [#allocation4], 1 }
 0x24b   :  { %1396 = vsyncpa [#allocation4 + $0x1], 1 }
 0x24c   :  { %1397 = vsyncpa [#allocation7], 1 }
 0x24d   :  { %1399 = vsyncpa [#allocation7 + $0x1], 1 }

</bundles_post_ra>
